<compile_context>
chip_gen: v5e
topology: v5e:2x2
jax: 0.10.0
libtpu: 0.0.40
codegen_flags: <defaults>
</compile_context>

<pallas_src>
import math

import jax
import jax.numpy as jnp
from jax import lax
from jax.experimental import pallas as pl
from jax.experimental.pallas import tpu as pltpu

IN_CHANNELS = 3
OUT_CHANNELS = 64
KERNEL_SIZE = 3
LANE = 128


def _round_up(x, m):
    return (x + m - 1) // m * m


def _conv1d_kernel(xc_ref, xh_ref, w_ref, o_ref):
    # xc_ref: (Bt, 3, TW)    current input W tile
    # xh_ref: (Bt, 3, 128)   first 128 cols of the *next* tile (halo for k=1,2)
    # w_ref : (64, 9)        weight reshaped to (C_out, C_in*K)
    # o_ref : (Bt, 64, TW)   output tile (TW % 128 == 0 -> dense lane stores)
    tw = o_ref.shape[-1]

    # Contiguous window of TW + 128 input columns starting at this tile.
    xw = jnp.concatenate([xc_ref[...], xh_ref[...]],
                         axis=-1).astype(jnp.float32)          # (Bt, 3, TW+128)
    w = w_ref[...].astype(jnp.float32)                         # (64, 9)

    acc = jnp.zeros(o_ref.shape, jnp.float32)                  # (Bt, 64, TW)
    for k in range(KERNEL_SIZE):
        xk = xw[:, :, k:k + tw]                                # (Bt, 3, TW)
        for c in range(IN_CHANNELS):
            j = c * KERNEL_SIZE + k
            tap = w[:, j:j + 1].reshape(1, OUT_CHANNELS, 1)    # (1, 64, 1)
            acc = acc + tap * xk[:, c:c + 1, :]                # broadcast MAC
    o_ref[...] = acc.astype(o_ref.dtype)


def conv1d_pallas(x, weight):
    """x: (B, 3, W_in), weight: (64, 3, 3) -> (B, 64, W_in - 2)."""
    B, C, W_in = x.shape
    assert C == IN_CHANNELS and W_in >= KERNEL_SIZE
    W_out = W_in - KERNEL_SIZE + 1

    # ---- W tiling: lane-dense (multiple of 128), TW up to 512 ----
    W_out_128 = _round_up(W_out, LANE)
    TW = min(W_out_128, 512)
    W_out_p = _round_up(W_out, TW)          # multiple of TW (and of 128)
    n_wt = W_out_p // TW
    W_in_p = W_out_p + LANE                 # room for the 128-wide halo block

    # ---- batch tiling: fold as many rows per step as fits a ~4 MiB budget ----
    bytes_per_row = 2 * 4 * (TW * (IN_CHANNELS + OUT_CHANNELS)
                             + LANE * IN_CHANNELS)   # double-buffered f32 blocks
    Bt = max(1, min(B, (4 << 20) // bytes_per_row))
    B_p = _round_up(B, Bt)
    n_b = B_p // Bt

    x_p = jnp.pad(x, ((0, B_p - B), (0, 0), (0, W_in_p - W_in)))
    w2d = weight.reshape(OUT_CHANNELS, IN_CHANNELS * KERNEL_SIZE)

    halo_stride = TW // LANE                # element offset (wt+1)*TW in 128-blocks

    out_p = pl.pallas_call(
        _conv1d_kernel,
        out_shape=jax.ShapeDtypeStruct((B_p, OUT_CHANNELS, W_out_p), x.dtype),
        grid_spec=pltpu.PrefetchScalarGridSpec(
            num_scalar_prefetch=0,
            grid=(n_b, n_wt),
            in_specs=[
                # current W tile
                pl.BlockSpec((Bt, IN_CHANNELS, TW),
                             lambda b, wt: (b, 0, wt)),
                # 128-wide halo = first lane-tile of the next W tile
                pl.BlockSpec((Bt, IN_CHANNELS, LANE),
                             lambda b, wt: (b, 0, (wt + 1) * halo_stride)),
                # weight, resident (block index constant -> DMA'd once)
                pl.BlockSpec((OUT_CHANNELS, IN_CHANNELS * KERNEL_SIZE),
                             lambda b, wt: (0, 0)),
            ],
            out_specs=pl.BlockSpec((Bt, OUT_CHANNELS, TW),
                                   lambda b, wt: (b, 0, wt)),
        ),
        compiler_params=pltpu.CompilerParams(
            dimension_semantics=("parallel", "parallel")),
    )(x_p, x_p, w2d)

    return out_p[:B, :, :W_out]


def init_weight(key):
    # Matches nn.init.kaiming_uniform_(w, a=sqrt(5)) for fan_in = 3*3 = 9.
    fan_in = IN_CHANNELS * KERNEL_SIZE
    bound = 1.0 / math.sqrt(fan_in)
    return jax.random.uniform(
        key, (OUT_CHANNELS, IN_CHANNELS, KERNEL_SIZE),
        dtype=jnp.float32, minval=-bound, maxval=bound)


def _reference(x, w):
    return lax.conv_general_dilated(
        x, w, window_strides=(1,), padding="VALID",
        dimension_numbers=("NCH", "OIH", "NCH"))


if __name__ == "__main__":
    key = jax.random.PRNGKey(0)
    k_x, k_w, k_x2 = jax.random.split(key, 3)
    w = init_weight(k_w)

    # Primary small-shape run: x (2, 3, 16) -> out (2, 64, 14).
    B, W_in = 2, 16
    x = jax.random.normal(k_x, (B, IN_CHANNELS, W_in), dtype=jnp.float32)
    out = conv1d_pallas(x, w)
    jax.block_until_ready(out)
    assert out.shape == (B, OUT_CHANNELS, W_in - KERNEL_SIZE + 1)
    assert jnp.allclose(out, _reference(x, w), atol=1e-5, rtol=1e-5)

    # Secondary check exercising the multi-W-tile + halo path (still small).
    W_in2 = 1300
    x2 = jax.random.normal(k_x2, (B, IN_CHANNELS, W_in2), dtype=jnp.float32)
    out2 = conv1d_pallas(x2, w)
    jax.block_until_ready(out2)
    assert out2.shape == (B, OUT_CHANNELS, W_in2 - KERNEL_SIZE + 1)
    assert jnp.allclose(out2, _reference(x2, w), atol=1e-5, rtol=1e-5)

    print("KERNEL_OK")
</pallas_src>

<mosaic_0001>
module attributes {stable_mosaic.version = 11 : i64} {
  func.func @_conv1d_kernel(%arg0: i32, %arg1: i32, %arg2: memref<2x3x128xf32, #tpu.memory_space<vmem>>, %arg3: memref<2x3x128xf32, #tpu.memory_space<vmem>>, %arg4: memref<64x9xf32, #tpu.memory_space<vmem>>, %arg5: memref<2x64x128xf32, #tpu.memory_space<vmem>>) attributes {dimension_semantics = [#tpu.dimension_semantics<parallel>, #tpu.dimension_semantics<parallel>], iteration_bounds = array<i64: 1, 1>, scalar_prefetch = 0 : i64, scratch_operands = 0 : i64, tpu.core_type = #tpu.core_type<tc>, window_params = [{transform_indices = @transform_0, window_bounds = array<i64: 2, 3, 128>}, {transform_indices = @transform_1, window_bounds = array<i64: 2, 3, 128>}, {pipeline_mode = #tpu.pipeline_mode<synchronous>, transform_indices = @transform_2, window_bounds = array<i64: 64, 9>}, {transform_indices = @transform_3, window_bounds = array<i64: 2, 64, 128>}]} {
    %c0 = arith.constant 0 : index
    %c0_0 = arith.constant 0 : index
    %c0_1 = arith.constant 0 : index
    %0 = vector.load %arg2[%c0, %c0_0, %c0_1] : memref<2x3x128xf32, #tpu.memory_space<vmem>>, vector<2x3x128xf32>
    %c0_2 = arith.constant 0 : index
    %c0_3 = arith.constant 0 : index
    %c0_4 = arith.constant 0 : index
    %1 = vector.load %arg3[%c0_2, %c0_3, %c0_4] : memref<2x3x128xf32, #tpu.memory_space<vmem>>, vector<2x3x128xf32>
    %2 = tpu.concatenate %0, %1 in 2 : vector<2x3x128xf32>, vector<2x3x128xf32> -> vector<2x3x256xf32>
    %c0_5 = arith.constant 0 : index
    %c0_6 = arith.constant 0 : index
    %3 = vector.load %arg4[%c0_5, %c0_6] : memref<64x9xf32, #tpu.memory_space<vmem>>, vector<64x9xf32>
    %cst = arith.constant 0.000000e+00 : f32
    %4 = vector.broadcast %cst : f32 to vector<2x64x128xf32>
    %5 = vector.extract_strided_slice %2 {offsets = [0, 0, 0], sizes = [2, 3, 128], strides = [1, 1, 1]} : vector<2x3x256xf32> to vector<2x3x128xf32>
    %6 = vector.extract_strided_slice %3 {offsets = [0, 0], sizes = [64, 1], strides = [1, 1]} : vector<64x9xf32> to vector<64x1xf32>
    %7 = vector.shape_cast %6 : vector<64x1xf32> to vector<1x64x1xf32>
    %8 = vector.extract_strided_slice %5 {offsets = [0, 0, 0], sizes = [2, 1, 128], strides = [1, 1, 1]} : vector<2x3x128xf32> to vector<2x1x128xf32>
    %9 = vector.broadcast %7 : vector<1x64x1xf32> to vector<2x64x128xf32>
    %10 = vector.broadcast %8 : vector<2x1x128xf32> to vector<2x64x128xf32>
    %11 = arith.mulf %9, %10 : vector<2x64x128xf32>
    %12 = arith.addf %4, %11 : vector<2x64x128xf32>
    %13 = vector.extract_strided_slice %3 {offsets = [0, 3], sizes = [64, 1], strides = [1, 1]} : vector<64x9xf32> to vector<64x1xf32>
    %14 = vector.shape_cast %13 : vector<64x1xf32> to vector<1x64x1xf32>
    %15 = vector.extract_strided_slice %5 {offsets = [0, 1, 0], sizes = [2, 1, 128], strides = [1, 1, 1]} : vector<2x3x128xf32> to vector<2x1x128xf32>
    %16 = vector.broadcast %14 : vector<1x64x1xf32> to vector<2x64x128xf32>
    %17 = vector.broadcast %15 : vector<2x1x128xf32> to vector<2x64x128xf32>
    %18 = arith.mulf %16, %17 : vector<2x64x128xf32>
    %19 = arith.addf %12, %18 : vector<2x64x128xf32>
    %20 = vector.extract_strided_slice %3 {offsets = [0, 6], sizes = [64, 1], strides = [1, 1]} : vector<64x9xf32> to vector<64x1xf32>
    %21 = vector.shape_cast %20 : vector<64x1xf32> to vector<1x64x1xf32>
    %22 = vector.extract_strided_slice %5 {offsets = [0, 2, 0], sizes = [2, 1, 128], strides = [1, 1, 1]} : vector<2x3x128xf32> to vector<2x1x128xf32>
    %23 = vector.broadcast %21 : vector<1x64x1xf32> to vector<2x64x128xf32>
    %24 = vector.broadcast %22 : vector<2x1x128xf32> to vector<2x64x128xf32>
    %25 = arith.mulf %23, %24 : vector<2x64x128xf32>
    %26 = arith.addf %19, %25 : vector<2x64x128xf32>
    %27 = vector.extract_strided_slice %2 {offsets = [0, 0, 1], sizes = [2, 3, 128], strides = [1, 1, 1]} : vector<2x3x256xf32> to vector<2x3x128xf32>
    %28 = vector.extract_strided_slice %3 {offsets = [0, 1], sizes = [64, 1], strides = [1, 1]} : vector<64x9xf32> to vector<64x1xf32>
    %29 = vector.shape_cast %28 : vector<64x1xf32> to vector<1x64x1xf32>
    %30 = vector.extract_strided_slice %27 {offsets = [0, 0, 0], sizes = [2, 1, 128], strides = [1, 1, 1]} : vector<2x3x128xf32> to vector<2x1x128xf32>
    %31 = vector.broadcast %29 : vector<1x64x1xf32> to vector<2x64x128xf32>
    %32 = vector.broadcast %30 : vector<2x1x128xf32> to vector<2x64x128xf32>
    %33 = arith.mulf %31, %32 : vector<2x64x128xf32>
    %34 = arith.addf %26, %33 : vector<2x64x128xf32>
    %35 = vector.extract_strided_slice %3 {offsets = [0, 4], sizes = [64, 1], strides = [1, 1]} : vector<64x9xf32> to vector<64x1xf32>
    %36 = vector.shape_cast %35 : vector<64x1xf32> to vector<1x64x1xf32>
    %37 = vector.extract_strided_slice %27 {offsets = [0, 1, 0], sizes = [2, 1, 128], strides = [1, 1, 1]} : vector<2x3x128xf32> to vector<2x1x128xf32>
    %38 = vector.broadcast %36 : vector<1x64x1xf32> to vector<2x64x128xf32>
    %39 = vector.broadcast %37 : vector<2x1x128xf32> to vector<2x64x128xf32>
    %40 = arith.mulf %38, %39 : vector<2x64x128xf32>
    %41 = arith.addf %34, %40 : vector<2x64x128xf32>
    %42 = vector.extract_strided_slice %3 {offsets = [0, 7], sizes = [64, 1], strides = [1, 1]} : vector<64x9xf32> to vector<64x1xf32>
    %43 = vector.shape_cast %42 : vector<64x1xf32> to vector<1x64x1xf32>
    %44 = vector.extract_strided_slice %27 {offsets = [0, 2, 0], sizes = [2, 1, 128], strides = [1, 1, 1]} : vector<2x3x128xf32> to vector<2x1x128xf32>
    %45 = vector.broadcast %43 : vector<1x64x1xf32> to vector<2x64x128xf32>
    %46 = vector.broadcast %44 : vector<2x1x128xf32> to vector<2x64x128xf32>
    %47 = arith.mulf %45, %46 : vector<2x64x128xf32>
    %48 = arith.addf %41, %47 : vector<2x64x128xf32>
    %49 = vector.extract_strided_slice %2 {offsets = [0, 0, 2], sizes = [2, 3, 128], strides = [1, 1, 1]} : vector<2x3x256xf32> to vector<2x3x128xf32>
    %50 = vector.extract_strided_slice %3 {offsets = [0, 2], sizes = [64, 1], strides = [1, 1]} : vector<64x9xf32> to vector<64x1xf32>
    %51 = vector.shape_cast %50 : vector<64x1xf32> to vector<1x64x1xf32>
    %52 = vector.extract_strided_slice %49 {offsets = [0, 0, 0], sizes = [2, 1, 128], strides = [1, 1, 1]} : vector<2x3x128xf32> to vector<2x1x128xf32>
    %53 = vector.broadcast %51 : vector<1x64x1xf32> to vector<2x64x128xf32>
    %54 = vector.broadcast %52 : vector<2x1x128xf32> to vector<2x64x128xf32>
    %55 = arith.mulf %53, %54 : vector<2x64x128xf32>
    %56 = arith.addf %48, %55 : vector<2x64x128xf32>
    %57 = vector.extract_strided_slice %3 {offsets = [0, 5], sizes = [64, 1], strides = [1, 1]} : vector<64x9xf32> to vector<64x1xf32>
    %58 = vector.shape_cast %57 : vector<64x1xf32> to vector<1x64x1xf32>
    %59 = vector.extract_strided_slice %49 {offsets = [0, 1, 0], sizes = [2, 1, 128], strides = [1, 1, 1]} : vector<2x3x128xf32> to vector<2x1x128xf32>
    %60 = vector.broadcast %58 : vector<1x64x1xf32> to vector<2x64x128xf32>
    %61 = vector.broadcast %59 : vector<2x1x128xf32> to vector<2x64x128xf32>
    %62 = arith.mulf %60, %61 : vector<2x64x128xf32>
    %63 = arith.addf %56, %62 : vector<2x64x128xf32>
    %64 = vector.extract_strided_slice %3 {offsets = [0, 8], sizes = [64, 1], strides = [1, 1]} : vector<64x9xf32> to vector<64x1xf32>
    %65 = vector.shape_cast %64 : vector<64x1xf32> to vector<1x64x1xf32>
    %66 = vector.extract_strided_slice %49 {offsets = [0, 2, 0], sizes = [2, 1, 128], strides = [1, 1, 1]} : vector<2x3x128xf32> to vector<2x1x128xf32>
    %67 = vector.broadcast %65 : vector<1x64x1xf32> to vector<2x64x128xf32>
    %68 = vector.broadcast %66 : vector<2x1x128xf32> to vector<2x64x128xf32>
    %69 = arith.mulf %67, %68 : vector<2x64x128xf32>
    %70 = arith.addf %63, %69 : vector<2x64x128xf32>
    %c0_7 = arith.constant 0 : index
    %c0_8 = arith.constant 0 : index
    %c0_9 = arith.constant 0 : index
    %71 = vector.load %arg5[%c0_7, %c0_8, %c0_9] : memref<2x64x128xf32, #tpu.memory_space<vmem>>, vector<2x64x128xf32>
    tpu.vector_store %arg5[%c0_7, %c0_8, %c0_9], %70 {strides = array<i32>} : memref<2x64x128xf32, #tpu.memory_space<vmem>>, vector<2x64x128xf32>,
    return
  }
  func.func @transform_0(%arg0: i32, %arg1: i32) -> (i32, i32, i32) {
    %c0_i32 = arith.constant 0 : i32
    %c0_i32_0 = arith.constant 0 : i32
    return %arg0, %c0_i32, %arg1 : i32, i32, i32
  }
  func.func @transform_1(%arg0: i32, %arg1: i32) -> (i32, i32, i32) {
    %c1_i32 = arith.constant 1 : i32
    %0 = arith.addi %arg1, %c1_i32 : i32
    %c1_i32_0 = arith.constant 1 : i32
    %1 = arith.muli %0, %c1_i32_0 : i32
    %c0_i32 = arith.constant 0 : i32
    %c0_i32_1 = arith.constant 0 : i32
    return %arg0, %c0_i32, %1 : i32, i32, i32
  }
  func.func @transform_2(%arg0: i32, %arg1: i32) -> (i32, i32) {
    %c0_i32 = arith.constant 0 : i32
    %c0_i32_0 = arith.constant 0 : i32
    %c0_i32_1 = arith.constant 0 : i32
    return %c0_i32, %c0_i32_0 : i32, i32
  }
  func.func @transform_3(%arg0: i32, %arg1: i32) -> (i32, i32, i32) {
    %c0_i32 = arith.constant 0 : i32
    %c0_i32_0 = arith.constant 0 : i32
    return %arg0, %c0_i32, %arg1 : i32, i32, i32
  }
}

</mosaic_0001>

<bundles_post_ra>
// kernel: tpu_custom_call.1
= control target key start
LH: loop header
LB: loop body
LE: loop exit
PB: predicated region body
PF: predicated region fallthrough
CT: control target
= control target key end

     0   :  { %v1707_v3 = vmov 0   ;;  %s2939_s0 = inlined_call_operand.vmem [shape: f32[2,3,256], index: 0, kind: input, shape index: {}]   ;;  %s2940_s1 = inlined_call_operand.vmem [shape: f32[2,3,256], index: 1, kind: input, shape index: {}]   ;;  %s2941_s2 = inlined_call_operand.vmem [shape: f32[64,9], index: 2, kind: input, shape index: {}]   ;;  %s2942_s3 = inlined_call_operand.hbm [shape: f32[2,64,128], index: 3, kind: output, shape index: {}]  }
   0x1   :  { %v1744_v0 = vld [vmem:[%s2941_s2 + $0x20] sm:$0xff]  ;;  %v1749_v1 = vld [vmem:[%s2941_s2 + $0x10] sm:$0xff]  ;;  %1648 = vset.pattern.permute.xlu2 %v1707_v3  ;;  %1647 = vset.pattern.permute.xlu1 %v1707_v3 }
   0x2   :  { %v1754_v2 = vld [vmem:[%s2941_s2] sm:$0xff]  ;;  %1646 = vset.pattern.permute.xlu0 %v1707_v3  ;;  %147 = vperm.xlu2 %1648, %v1744_v0  }
   0x3   :  { %8 = vsyncpa [#allocation5], 0  ;;  %137 = vperm.xlu1 %1647, %v1749_v1   ;;  %127 = vperm.xlu0 %1646, %v1754_v2   ;;  %v1762_v4 = vld [vmem:[%s2941_s2 + $0x28] sm:$0xff]  ;;  %v1767_v5 = vld [vmem:[%s2941_s2 + $0x18] sm:$0xff]  ;;  %v1708_v9 = vmov 3   ;;  %v1709_v10 = vmov 6  }
   0x4   :  { %v1772_v6 = vld [vmem:[%s2941_s2 + $0x8] sm:$0xff]  ;;  %v1780_v7 = vld [vmem:[%s2941_s2 + $0x38] sm:$0xff]  ;;  %v1785_v8 = vld [vmem:[%s2941_s2 + $0x30] sm:$0xff]  ;;  %v1710_v13 = vmov 1   ;;  %vm493_vm0 = vcmask 1039360   ;;  %s1715_s8 = smov 126  }
   0x5   :  { %v27_v11 = vld [vmem:[%s2939_s0] sm:$0xf]  ;;  %v29_v12 = vld [vmem:[%s2939_s0 + $0x8] sm:$0xf]  ;;  %v1630_v20 = vld [vmem:[%s2940_s1 + $0x4] sm:$0xf] }
   0x6   :  { %28 = vst [vmem:[#allocation2] sm:$0xf] %v27_v11  ;;  %v1631_v30 = vld [vmem:[%s2940_s1 + $0xc] sm:$0xf]  ;;  %s1711_s1 = smov 127   ;;  %vm1122_vm1 = vcmask 1031168  }
   0x7   :  { %30 = vst [vmem:[#allocation2 + $0x4] sm:$0xf] %v29_v12  ;;  %s1609_s28 = sshll.u32 %s2942_s3, 4  ;;  %s1719_s29 = smov 128   ;;  %s1610_s28 = int_to_ptr.hbm [resolvable:$true] %s1609_s28 }
   0x8   :  { %78 = vst [vmem:[#allocation3] sm:$0xf] %v1630_v20  ;;  %s1720_s30 = smov 8  }
   0x9   :  { %80 = vst [vmem:[#allocation3 + $0x4] sm:$0xf] %v1631_v30 }
   0xa   :  { %152 = vperm.xlu2 %1648, %v1762_v4  }
   0xb   :  { %142 = vperm.xlu1 %1647, %v1767_v5   ;;  %132 = vperm.xlu0 %1646, %v1772_v6  }
   0xd   :  { %v1863_v35 = vld [vmem:[#allocation2] sm:$0x7] }
   0xe   :  { %v1871_v38 = vperm.slane %v1863_v35, 0 }
   0xf   :  { %v1861_v34 = vld [vmem:[#allocation3] sm:$0x7] }
  0x10   :  { %v1868_v37 = vperm.slane %v1861_v34, 0  ;;  %v1912_v12 = vld [vmem:[#allocation3 + $0x4] sm:$0x7] }
  0x11   :  { %v1920_v20 = vperm.slane %v1912_v12, 0 }
  0x12   :  { %1649 = vset.pattern.permute.xlu2 %v1708_v9 }
  0x13   :  { %162 = vperm.xlu1 %1647, %v1780_v7   ;;  %157 = vperm.xlu0 %1646, %v1785_v8  }
  0x14   :  { %200 = vperm.xlu2 %1649, %v1754_v2  }
  0x1b   :  { %1651 = vset.pattern.permute.xlu1 %v1708_v9  ;;  %1650 = vset.pattern.permute.xlu0 %v1708_v9 }
  0x1c   :  { %208 = vperm.xlu1 %1651, %v1749_v1   ;;  %212 = vperm.xlu2 %1649, %v1767_v5  }
  0x1d   :  { %204 = vperm.xlu0 %1650, %v1772_v6  }
  0x24   :  { %216 = vperm.xlu1 %1651, %v1744_v0   ;;  %220 = vperm.xlu2 %1649, %v1762_v4  }
  0x25   :  { %224 = vperm.xlu0 %1650, %v1785_v8  }
  0x2c   :  { %228 = vperm.xlu1 %1651, %v1780_v7   ;;  %1652 = vset.pattern.permute.xlu2 %v1709_v10 }
  0x2d   :  { %1653 = vset.pattern.permute.xlu0 %v1709_v10  ;;  %266 = vperm.xlu2 %1652, %v1754_v2  }
  0x2e   :  { %270 = vperm.xlu0 %1653, %v1772_v6  }
  0x34   :  { %1654 = vset.pattern.permute.xlu1 %v1709_v10 }
  0x35   :  { %274 = vperm.xlu1 %1654, %v1749_v1   ;;  %278 = vperm.xlu2 %1652, %v1767_v5  }
  0x36   :  { %290 = vperm.xlu0 %1653, %v1785_v8  }
  0x3d   :  { %282 = vperm.xlu1 %1654, %v1744_v0   ;;  %286 = vperm.xlu2 %1652, %v1762_v4  }
  0x3e   :  { %1656 = vset.pattern.permute.xlu0 %v1710_v13 }
  0x3f   :  { %336 = vperm.xlu0 %1656, %v1772_v6  }
  0x45   :  { %294 = vperm.xlu1 %1654, %v1780_v7   ;;  %1655 = vset.pattern.permute.xlu2 %v1710_v13 }
  0x46   :  { %332 = vperm.xlu2 %1655, %v1754_v2  }
  0x47   :  { %356 = vperm.xlu0 %1656, %v1785_v8  }
  0x4d   :  { %1657 = vset.pattern.permute.xlu1 %v1710_v13  ;;  %v1916_v13 = vld [vmem:[#allocation2 + $0x4] sm:$0x7] }
  0x4e   :  { %340 = vperm.xlu1 %1657, %v1749_v1   ;;  %344 = vperm.xlu2 %1655, %v1767_v5   ;;  %v1923_v30 = vperm.slane %v1916_v13, 0 }
  0x56   :  { %348 = vperm.xlu1 %1657, %v1744_v0   ;;  %352 = vperm.xlu2 %1655, %v1762_v4  }
  0x5c   :  { %v1818_v14 = vpop.permute.xlu2 %147 }
  0x5e   :  { %360 = vperm.xlu1 %1657, %v1780_v7  }
  0x64   :  { %v1821_v15 = vpop.permute.xlu2 %152 }
  0x6e   :  { %v1823_v16 = vpop.permute.xlu2 %200 }
  0x75   :  { %v1825_v17 = vpop.permute.xlu1 %137  ;;  %v1827_v18 = vpop.permute.xlu0 %127 }
  0x76   :  { %2963 = vst [vmem:[#allocation7_spill] sm:$0xff] %v1825_v17  ;;  %v1829_v19 = vpop.permute.xlu2 %212 }
  0x7d   :  { %v1834_v21 = vpop.permute.xlu1 %142  ;;  %v1836_v22 = vpop.permute.xlu0 %132 }
  0x7e   :  { %v1838_v23 = vpop.permute.xlu2 %220 }
  0x85   :  { %v1840_v24 = vpop.permute.xlu1 %162  ;;  %v1842_v25 = vpop.permute.xlu0 %157 }
  0x86   :  { %2964 = vst [vmem:[#allocation8_spill] sm:$0xff] %v1840_v24 }
  0x87   :  { %2965 = vst [vmem:[#allocation9_spill] sm:$0xff] %v1842_v25  ;;  %v1844_v26 = vpop.permute.xlu2 %266 }
  0x8e   :  { %v1846_v27 = vpop.permute.xlu1 %208 }
  0x8f   :  { %2966 = vst [vmem:[#allocation10_spill] sm:$0xff] %v1846_v27  ;;  %v1848_v28 = vpop.permute.xlu0 %204  ;;  %v1850_v29 = vpop.permute.xlu2 %278 }
  0x96   :  { %v1855_v31 = vpop.permute.xlu1 %216 }
  0x97   :  { %v1857_v32 = vpop.permute.xlu0 %224  ;;  %v1859_v33 = vpop.permute.xlu2 %286 }
  0x9e   :  { %v1865_v36 = vpop.permute.xlu1 %228 }
  0x9f   :  { %2967 = vst [vmem:[#allocation11_spill] sm:$0xff] %v1865_v36 }
  0xa0   :  { %v1873_v39 = vpop.permute.xlu0 %270  ;;  %v333_v40 = vpop.permute.xlu2 %332 }
  0xa1   :  { %v366_v41 = vmul.f32 %v1868_v37, %v333_v40  ;;  %v365_v42 = vmul.f32 %v333_v40, %v1871_v38 }
  0xa3   :  { %431 = vrot.lane.b32.xlu0 %v366_v41, %s1711_s1  ;;  %429 = vrot.lane.b32.xlu2 %v365_v42, %s1711_s1  ;;  %v381_v41 = vmul.f32 %v333_v40, %v1923_v30  ;;  %v382_v42 = vmul.f32 %v1920_v20, %v333_v40 }
  0xa7   :  { %v1879_v43 = vpop.permute.xlu1 %274 }
  0xa8   :  { %2968 = vst [vmem:[#allocation12_spill] sm:$0xff] %v1879_v43  ;;  %v1881_v44 = vpop.permute.xlu0 %290  ;;  %v345_v49 = vpop.permute.xlu2 %344 }
  0xa9   :  { %2969 = vst [vmem:[#allocation13_spill] sm:$0xff] %v1881_v44  ;;  %v371_v51 = vmul.f32 %v345_v49, %v1871_v38  ;;  %v372_v56 = vmul.f32 %v1868_v37, %v345_v49  ;;  %v387_v40 = vmul.f32 %v345_v49, %v1923_v30 }
  0xaf   :  { %v1883_v45 = vpop.permute.xlu1 %282 }
  0xb0   :  { %v353_v59 = vpop.permute.xlu2 %352 }
  0xb1   :  { %v337_v46 = vpop.permute.xlu0 %336  ;;  %v375_v61 = vmul.f32 %v353_v59, %v1871_v38  ;;  %v376_v62 = vmul.f32 %v1868_v37, %v353_v59 }
  0xb2   :  { %v367_v47 = vmul.f32 %v337_v46, %v1871_v38  ;;  %v368_v48 = vmul.f32 %v1868_v37, %v337_v46 }
  0xb4   :  { %433 = vrot.lane.b32.xlu1 %v367_v47, %s1711_s1  ;;  %435 = vrot.lane.b32.xlu2 %v368_v48, %s1711_s1  ;;  %v383_v47 = vmul.f32 %v337_v46, %v1923_v30  ;;  %v1712_v48 = vmov 4  }
  0xb5   :  { %1658 = vset.pattern.permute.xlu1 %v1712_v48  ;;  %1659 = vset.pattern.permute.xlu2 %v1712_v48 }
  0xb6   :  { %1660 = vset.pattern.permute.xlu0 %v1712_v48 }
  0xb7   :  { %v1889_v50 = vpop.permute.xlu1 %294 }
  0xb8   :  { %2970 = vst [vmem:[#allocation14_spill] sm:$0xff] %v1889_v50 }
  0xb9   :  { %v357_v60 = vpop.permute.xlu0 %356 }
  0xba   :  { %v377_v63 = vmul.f32 %v357_v60, %v1871_v38  ;;  %v378_v9 = vmul.f32 %v1868_v37, %v357_v60 }
  0xbc   :  { %441 = vrot.lane.b32.xlu2 %v371_v51, %s1711_s1  ;;  %v384_v51 = vmul.f32 %v1920_v20, %v337_v46 }
  0xc0   :  { %v341_v52 = vpop.permute.xlu1 %340 }
  0xc1   :  { %v369_v53 = vmul.f32 %v341_v52, %v1871_v38  ;;  %v370_v54 = vmul.f32 %v1868_v37, %v341_v52 }
  0xc3   :  { %437 = vrot.lane.b32.xlu0 %v369_v53, %s1711_s1  ;;  %439 = vrot.lane.b32.xlu1 %v370_v54, %s1711_s1  ;;  %v385_v53 = vmul.f32 %v341_v52, %v1923_v30  ;;  %v386_v54 = vmul.f32 %v1920_v20, %v341_v52  ;;  %v391_v52 = vmul.f32 %v353_v59, %v1923_v30 }
  0xc8   :  { %v349_v55 = vpop.permute.xlu1 %348 }
  0xc9   :  { %v373_v57 = vmul.f32 %v349_v55, %v1871_v38  ;;  %v374_v58 = vmul.f32 %v1868_v37, %v349_v55  ;;  %v390_v46 = vmul.f32 %v1920_v20, %v349_v55 }
  0xcb   :  { %443 = vrot.lane.b32.xlu0 %v372_v56, %s1711_s1  ;;  %445 = vrot.lane.b32.xlu1 %v373_v57, %s1711_s1  ;;  %v388_v56 = vmul.f32 %v1920_v20, %v345_v49  ;;  %v389_v57 = vmul.f32 %v349_v55, %v1923_v30  ;;  %v393_v49 = vmul.f32 %v357_v60, %v1923_v30 }
  0xcc   :  { %447 = vrot.lane.b32.xlu2 %v374_v58, %s1711_s1  ;;  %v392_v58 = vmul.f32 %v1920_v20, %v353_v59 }
  0xd0   :  { %v361_v3 = vpop.permute.xlu1 %360 }
  0xd1   :  { %v379_v10 = vmul.f32 %v361_v3, %v1871_v38  ;;  %v380_v11 = vmul.f32 %v1868_v37, %v361_v3  ;;  %v396_v55 = vmul.f32 %v1920_v20, %v361_v3 }
  0xd3   :  { %449 = vrot.lane.b32.xlu0 %v375_v61, %s1711_s1  ;;  %451 = vrot.lane.b32.xlu1 %v376_v62, %s1711_s1  ;;  %v394_v61 = vmul.f32 %v1920_v20, %v357_v60  ;;  %v395_v62 = vmul.f32 %v361_v3, %v1923_v30 }
  0xd4   :  { %453 = vrot.lane.b32.xlu2 %v377_v63, %s1711_s1 }
  0xdb   :  { %455 = vrot.lane.b32.xlu0 %v378_v9, %s1711_s1  ;;  %457 = vrot.lane.b32.xlu1 %v379_v10, %s1711_s1 }
  0xdc   :  { %459 = vrot.lane.b32.xlu2 %v380_v11, %s1711_s1 }
  0xe3   :  { %461 = vrot.lane.b32.xlu0 %v381_v41, %s1711_s1  ;;  %463 = vrot.lane.b32.xlu1 %v382_v42, %s1711_s1 }
  0xe4   :  { %465 = vrot.lane.b32.xlu2 %v383_v47, %s1711_s1 }
  0xeb   :  { %467 = vrot.lane.b32.xlu0 %v384_v51, %s1711_s1  ;;  %469 = vrot.lane.b32.xlu1 %v385_v53, %s1711_s1 }
  0xec   :  { %471 = vrot.lane.b32.xlu2 %v386_v54, %s1711_s1 }
  0xf3   :  { %473 = vrot.lane.b32.xlu0 %v387_v40, %s1711_s1  ;;  %475 = vrot.lane.b32.xlu1 %v388_v56, %s1711_s1 }
  0xf4   :  { %477 = vrot.lane.b32.xlu2 %v389_v57, %s1711_s1 }
  0xfb   :  { %479 = vrot.lane.b32.xlu0 %v390_v46, %s1711_s1  ;;  %481 = vrot.lane.b32.xlu1 %v391_v52, %s1711_s1 }
  0xfc   :  { %483 = vrot.lane.b32.xlu2 %v392_v58, %s1711_s1 }
  0xfd   :  { %v1956_v59 = vpop.permute.xlu2 %429 }
 0x103   :  { %485 = vrot.lane.b32.xlu0 %v393_v49, %s1711_s1  ;;  %487 = vrot.lane.b32.xlu1 %v394_v61, %s1711_s1 }
 0x104   :  { %489 = vrot.lane.b32.xlu2 %v395_v62, %s1711_s1 }
 0x10b   :  { %491 = vrot.lane.b32.xlu0 %v396_v55, %s1711_s1  ;;  %543 = vperm.xlu1 %1658, %v1754_v2  }
 0x10c   :  { %547 = vperm.xlu2 %1659, %v1772_v6  }
 0x10e   :  { %v1963_v60 = vpop.permute.xlu2 %435 }
 0x113   :  { %551 = vperm.xlu0 %1660, %v1749_v1   ;;  %555 = vperm.xlu1 %1658, %v1767_v5  }
 0x114   :  { %559 = vperm.xlu2 %1659, %v1744_v0  }
 0x115   :  { %v1973_v9 = vpop.permute.xlu0 %431 }
 0x116   :  { %v1969_v63 = vpop.permute.xlu2 %441 }
 0x11b   :  { %571 = vperm.xlu0 %1660, %v1780_v7   ;;  %563 = vperm.xlu1 %1658, %v1762_v4  }
 0x11c   :  { %567 = vperm.xlu2 %1659, %v1785_v8  }
 0x126   :  { %v1971_v3 = vpop.permute.xlu2 %447  ;;  %v1975_v10 = vpop.permute.xlu1 %433 }
 0x12e   :  { %v1977_v11 = vpop.permute.xlu2 %453 }
 0x12f   :  { %2971 = vst [vmem:[#allocation15_spill] sm:$0xff] %v1977_v11 }
 0x135   :  { %v1979_v41 = vpop.permute.xlu0 %437  ;;  %v1981_v42 = vpop.permute.xlu1 %439 }
 0x136   :  { %2972 = vst [vmem:[#allocation16_spill] sm:$0xff] %v1979_v41  ;;  %v1983_v47 = vpop.permute.xlu2 %459 }
 0x137   :  { %2973 = vst [vmem:[#allocation17_spill] sm:$0xff] %v1981_v42  ;;  %v2016_v42 = vperm.slane %v1863_v35, 1 }
 0x138   :  { %2974 = vst [vmem:[#allocation18_spill] sm:$0xff] %v1983_v47 }
 0x13d   :  { %v1985_v48 = vpop.permute.xlu0 %443  ;;  %v1987_v51 = vpop.permute.xlu1 %445 }
 0x13e   :  { %v1989_v53 = vpop.permute.xlu2 %465 }
 0x13f   :  { %2975 = vst [vmem:[#allocation19_spill] sm:$0xff] %v1989_v53 }
 0x145   :  { %v1991_v54 = vpop.permute.xlu0 %449  ;;  %v1993_v40 = vpop.permute.xlu1 %451 }
 0x146   :  { %2976 = vst [vmem:[#allocation20_spill] sm:$0xff] %v1991_v54  ;;  %v1995_v56 = vpop.permute.xlu2 %471 }
 0x147   :  { %2977 = vst [vmem:[#allocation21_spill] sm:$0xff] %v1993_v40 }
 0x148   :  { %2978 = vst [vmem:[#allocation22_spill] sm:$0xff] %v1995_v56 }
 0x14d   :  { %v1997_v57 = vpop.permute.xlu0 %455  ;;  %v1999_v46 = vpop.permute.xlu1 %457 }
 0x14e   :  { %2979 = vst [vmem:[#allocation23_spill] sm:$0xff] %v1997_v57  ;;  %v2001_v52 = vpop.permute.xlu2 %477 }
 0x14f   :  { %2980 = vst [vmem:[#allocation24_spill] sm:$0xff] %v1999_v46 }
 0x150   :  { %2981 = vst [vmem:[#allocation25_spill] sm:$0xff] %v2001_v52 }
 0x155   :  { %v2003_v58 = vpop.permute.xlu0 %461  ;;  %v2005_v49 = vpop.permute.xlu1 %463 }
 0x156   :  { %2982 = vst [vmem:[#allocation26_spill] sm:$0xff] %v2003_v58  ;;  %v2007_v61 = vpop.permute.xlu2 %483 }
 0x157   :  { %2983 = vst [vmem:[#allocation27_spill] sm:$0xff] %v2005_v49 }
 0x158   :  { %2984 = vst [vmem:[#allocation28_spill] sm:$0xff] %v2007_v61 }
 0x15d   :  { %v2009_v62 = vpop.permute.xlu0 %467  ;;  %v2011_v55 = vpop.permute.xlu1 %469 }
 0x15e   :  { %2985 = vst [vmem:[#allocation29_spill] sm:$0xff] %v2009_v62  ;;  %v2013_v41 = vpop.permute.xlu2 %489 }
 0x15f   :  { %2986 = vst [vmem:[#allocation30_spill] sm:$0xff] %v2011_v55 }
 0x160   :  { %2987 = vst [vmem:[#allocation31_spill] sm:$0xff] %v2013_v41  ;;  %v2033_v41 = vperm.slane %v1861_v34, 1 }
 0x162   :  { %2994 = vst [vmem:[#allocation38_spill] sm:$0xff] %v2033_v41 }
 0x165   :  { %v2018_v56 = vpop.permute.xlu0 %473  ;;  %v2020_v43 = vpop.permute.xlu1 %475 }
 0x166   :  { %2988 = vst [vmem:[#allocation32_spill] sm:$0xff] %v2018_v56  ;;  %v548_v52 = vpop.permute.xlu2 %547 }
 0x167   :  { %2989 = vst [vmem:[#allocation33_spill] sm:$0xff] %v2020_v43  ;;  %v578_v17 = vmul.f32 %v548_v52, %v2016_v42 }
 0x169   :  { %644 = vrot.lane.b32.xlu0 %v578_v17, %s1711_s1 }
 0x16d   :  { %v2024_v27 = vpop.permute.xlu0 %479  ;;  %v2026_v61 = vpop.permute.xlu1 %481 }
 0x16e   :  { %2990 = vst [vmem:[#allocation34_spill] sm:$0xff] %v2024_v27  ;;  %v560_v27 = vpop.permute.xlu2 %559 }
 0x16f   :  { %2991 = vst [vmem:[#allocation35_spill] sm:$0xff] %v2026_v61 }
 0x175   :  { %v2028_v53 = vpop.permute.xlu0 %485  ;;  %v2030_v55 = vpop.permute.xlu1 %487 }
 0x176   :  { %2992 = vst [vmem:[#allocation36_spill] sm:$0xff] %v2028_v53  ;;  %v579_v53 = vmul.f32 %v2033_v41, %v548_v52  ;;  %v568_v47 = vpop.permute.xlu2 %567 }
 0x177   :  { %2993 = vst [vmem:[#allocation37_spill] sm:$0xff] %v2030_v55 }
 0x17d   :  { %v2035_v62 = vpop.permute.xlu0 %491  ;;  %v544_v56 = vpop.permute.xlu1 %543 }
 0x17e   :  { %2995 = vst [vmem:[#allocation39_spill] sm:$0xff] %v2035_v62  ;;  %v576_v43 = vmul.f32 %v544_v56, %v2016_v42  ;;  %v577_v58 = vmul.f32 %v2033_v41, %v544_v56 }
 0x180   :  { %640 = vrot.lane.b32.xlu1 %v576_v43, %s1711_s1  ;;  %642 = vrot.lane.b32.xlu2 %v577_v58, %s1711_s1  ;;  %v584_v58 = vmul.f32 %v560_v27, %v2016_v42 }
 0x185   :  { %v552_v17 = vpop.permute.xlu0 %551  ;;  %v556_v62 = vpop.permute.xlu1 %555 }
 0x186   :  { %v580_v61 = vmul.f32 %v552_v17, %v2016_v42  ;;  %v581_v55 = vmul.f32 %v2033_v41, %v552_v17  ;;  %v583_v49 = vmul.f32 %v2033_v41, %v556_v62  ;;  %v582_v43 = vmul.f32 %v556_v62, %v2016_v42 }
 0x188   :  { %648 = vrot.lane.b32.xlu2 %v580_v61, %s1711_s1  ;;  %646 = vrot.lane.b32.xlu1 %v579_v53, %s1711_s1  ;;  %v585_v53 = vmul.f32 %v2033_v41, %v560_v27 }
 0x189   :  { %650 = vrot.lane.b32.xlu0 %v581_v55, %s1711_s1 }
 0x18d   :  { %v564_v46 = vpop.permute.xlu1 %563  ;;  %v572_v50 = vpop.permute.xlu0 %571 }
 0x18e   :  { %v586_v61 = vmul.f32 %v564_v46, %v2016_v42  ;;  %v587_v55 = vmul.f32 %v2033_v41, %v564_v46  ;;  %v591_v24 = vmul.f32 %v2033_v41, %v572_v50 }
 0x190   :  { %654 = vrot.lane.b32.xlu2 %v583_v49, %s1711_s1  ;;  %652 = vrot.lane.b32.xlu1 %v582_v43, %s1711_s1  ;;  %v589_v49 = vmul.f32 %v2033_v41, %v568_v47  ;;  %v588_v43 = vmul.f32 %v568_v47, %v2016_v42 }
 0x191   :  { %656 = vrot.lane.b32.xlu0 %v584_v58, %s1711_s1  ;;  %v590_v58 = vmul.f32 %v572_v50, %v2016_v42 }
 0x198   :  { %660 = vrot.lane.b32.xlu2 %v586_v61, %s1711_s1  ;;  %658 = vrot.lane.b32.xlu1 %v585_v53, %s1711_s1  ;;  %v2066_v61 = vperm.slane %v1912_v12, 1  ;;  %v2069_v53 = vperm.slane %v1916_v13, 1 }
 0x199   :  { %662 = vrot.lane.b32.xlu0 %v587_v55, %s1711_s1 }
 0x19a   :  { %2996 = vst [vmem:[#allocation40_spill] sm:$0xff] %v2066_v61  ;;  %v592_v55 = vmul.f32 %v544_v56, %v2069_v53  ;;  %v593_v36 = vmul.f32 %v2066_v61, %v544_v56  ;;  %v596_v11 = vmul.f32 %v552_v17, %v2069_v53  ;;  %v599_v56 = vmul.f32 %v2066_v61, %v556_v62 }
 0x19b   :  { %2997 = vst [vmem:[#allocation41_spill] sm:$0xff] %v2069_v53 }
 0x1a0   :  { %666 = vrot.lane.b32.xlu2 %v589_v49, %s1711_s1  ;;  %664 = vrot.lane.b32.xlu1 %v588_v43, %s1711_s1  ;;  %v1713_v49 = vmov 7   ;;  %v595_v43 = vmul.f32 %v2066_v61, %v548_v52 }
 0x1a1   :  { %668 = vrot.lane.b32.xlu0 %v590_v58, %s1711_s1  ;;  %1662 = vset.pattern.permute.xlu1 %v1713_v49  ;;  %v594_v58 = vmul.f32 %v548_v52, %v2069_v53  ;;  %v601_v52 = vmul.f32 %v2066_v61, %v560_v27 }
 0x1a2   :  { %1661 = vset.pattern.permute.xlu0 %v1713_v49  ;;  %1663 = vset.pattern.permute.xlu2 %v1713_v49  ;;  %v602_v49 = vmul.f32 %v564_v46, %v2069_v53 }
 0x1a8   :  { %672 = vrot.lane.b32.xlu2 %v592_v55, %s1711_s1  ;;  %670 = vrot.lane.b32.xlu1 %v591_v24, %s1711_s1  ;;  %v598_v24 = vmul.f32 %v556_v62, %v2069_v53  ;;  %v600_v55 = vmul.f32 %v560_v27, %v2069_v53  ;;  %v603_v62 = vmul.f32 %v2066_v61, %v564_v46 }
 0x1a9   :  { %674 = vrot.lane.b32.xlu0 %v593_v36, %s1711_s1  ;;  %v597_v36 = vmul.f32 %v2066_v61, %v552_v17  ;;  %v605_v17 = vmul.f32 %v2066_v61, %v568_v47  ;;  %v607_v27 = vmul.f32 %v2066_v61, %v572_v50 }
 0x1b0   :  { %678 = vrot.lane.b32.xlu2 %v595_v43, %s1711_s1  ;;  %676 = vrot.lane.b32.xlu1 %v594_v58, %s1711_s1  ;;  %v606_v43 = vmul.f32 %v572_v50, %v2069_v53 }
 0x1b1   :  { %680 = vrot.lane.b32.xlu0 %v596_v11, %s1711_s1  ;;  %v604_v11 = vmul.f32 %v568_v47, %v2069_v53 }
 0x1b8   :  { %684 = vrot.lane.b32.xlu2 %v598_v24, %s1711_s1  ;;  %682 = vrot.lane.b32.xlu1 %v597_v36, %s1711_s1 }
 0x1b9   :  { %686 = vrot.lane.b32.xlu0 %v599_v56, %s1711_s1 }
 0x1c0   :  { %690 = vrot.lane.b32.xlu2 %v601_v52, %s1711_s1  ;;  %688 = vrot.lane.b32.xlu1 %v600_v55, %s1711_s1 }
 0x1c1   :  { %692 = vrot.lane.b32.xlu0 %v602_v49, %s1711_s1 }
 0x1c8   :  { %696 = vrot.lane.b32.xlu2 %v604_v11, %s1711_s1  ;;  %694 = vrot.lane.b32.xlu1 %v603_v62, %s1711_s1 }
 0x1c9   :  { %698 = vrot.lane.b32.xlu0 %v605_v17, %s1711_s1 }
 0x1d0   :  { %702 = vrot.lane.b32.xlu2 %v607_v27, %s1711_s1  ;;  %700 = vrot.lane.b32.xlu1 %v606_v43, %s1711_s1 }
 0x1d1   :  { %753 = vperm.xlu0 %1661, %v1754_v2  }
 0x1d8   :  { %757 = vperm.xlu1 %1662, %v1772_v6   ;;  %761 = vperm.xlu2 %1663, %v1749_v1  }
 0x1d9   :  { %773 = vperm.xlu0 %1661, %v1762_v4  }
 0x1da   :  { %v2109_v47 = vpop.permute.xlu2 %642 }
 0x1db   :  { %v2119_v58 = vpop.permute.xlu0 %644 }
 0x1e0   :  { %765 = vperm.xlu1 %1662, %v1767_v5   ;;  %769 = vperm.xlu2 %1663, %v1744_v0  }
 0x1e2   :  { %v2113_v46 = vpop.permute.xlu2 %648 }
 0x1e3   :  { %2998 = vst [vmem:[#allocation42_spill] sm:$0xff] %v2113_v46 }
 0x1e8   :  { %777 = vperm.xlu1 %1662, %v1785_v8   ;;  %781 = vperm.xlu2 %1663, %v1780_v7  }
 0x1ea   :  { %v2117_v50 = vpop.permute.xlu2 %654 }
 0x1f2   :  { %v2121_v24 = vpop.permute.xlu1 %640  ;;  %v2125_v56 = vpop.permute.xlu2 %660 }
 0x1f3   :  { %2999 = vst [vmem:[#allocation43_spill] sm:$0xff] %v2125_v56 }
 0x1fa   :  { %v2123_v36 = vpop.permute.xlu1 %646  ;;  %v2133_v11 = vpop.permute.xlu2 %666 }
 0x1fb   :  { %v2127_v52 = vpop.permute.xlu0 %650  ;;  %3001 = vst [vmem:[#allocation45_spill] sm:$0xff] %v2133_v11 }
 0x1fc   :  { %3000 = vst [vmem:[#allocation44_spill] sm:$0xff] %v2127_v52 }
 0x202   :  { %v2129_v55 = vpop.permute.xlu1 %652  ;;  %v2139_v27 = vpop.permute.xlu2 %672 }
 0x203   :  { %v2131_v49 = vpop.permute.xlu0 %656  ;;  %3003 = vst [vmem:[#allocation47_spill] sm:$0xff] %v2139_v27 }
 0x20a   :  { %v2135_v62 = vpop.permute.xlu1 %658  ;;  %v2145_v61 = vpop.permute.xlu2 %678 }
 0x20b   :  { %v2137_v17 = vpop.permute.xlu0 %662  ;;  %3006 = vst [vmem:[#allocation50_spill] sm:$0xff] %v2145_v61 }
 0x20c   :  { %3002 = vst [vmem:[#allocation46_spill] sm:$0xff] %v2137_v17 }
 0x212   :  { %v2141_v43 = vpop.permute.xlu1 %664  ;;  %v2153_v56 = vpop.permute.xlu2 %684 }
 0x213   :  { %3004 = vst [vmem:[#allocation48_spill] sm:$0xff] %v2141_v43  ;;  %v2143_v46 = vpop.permute.xlu0 %668 }
 0x214   :  { %3005 = vst [vmem:[#allocation49_spill] sm:$0xff] %v2143_v46 }
 0x215   :  { %3010 = vst [vmem:[#allocation54_spill] sm:$0xff] %v2153_v56  ;;  %v2174_v56 = vperm.slane %v1861_v34, 2 }
 0x217   :  { %3020 = vst [vmem:[#allocation64_spill] sm:$0xff] %v2174_v56 }
 0x21a   :  { %v2147_v41 = vpop.permute.xlu1 %670  ;;  %v2161_v27 = vpop.permute.xlu2 %690 }
 0x21b   :  { %3007 = vst [vmem:[#allocation51_spill] sm:$0xff] %v2147_v41  ;;  %v2149_v52 = vpop.permute.xlu0 %674 }
 0x21c   :  { %3008 = vst [vmem:[#allocation52_spill] sm:$0xff] %v2149_v52 }
 0x21d   :  { %3014 = vst [vmem:[#allocation58_spill] sm:$0xff] %v2161_v27 }
 0x222   :  { %v2151_v53 = vpop.permute.xlu1 %676  ;;  %v2167_v61 = vpop.permute.xlu2 %696 }
 0x223   :  { %3009 = vst [vmem:[#allocation53_spill] sm:$0xff] %v2151_v53  ;;  %v2155_v11 = vpop.permute.xlu0 %680 }
 0x224   :  { %3011 = vst [vmem:[#allocation55_spill] sm:$0xff] %v2155_v11 }
 0x225   :  { %3017 = vst [vmem:[#allocation61_spill] sm:$0xff] %v2167_v61 }
 0x22a   :  { %v2157_v57 = vpop.permute.xlu1 %682  ;;  %v2176_v11 = vpop.permute.xlu2 %702 }
 0x22b   :  { %3012 = vst [vmem:[#allocation56_spill] sm:$0xff] %v2157_v57  ;;  %v2159_v17 = vpop.permute.xlu0 %686  ;;  %v2179_v57 = vperm.slane %v1863_v35, 2 }
 0x22c   :  { %3013 = vst [vmem:[#allocation57_spill] sm:$0xff] %v2159_v17 }
 0x22d   :  { %3021 = vst [vmem:[#allocation65_spill] sm:$0xff] %v2176_v11 }
 0x232   :  { %v2163_v43 = vpop.permute.xlu1 %688  ;;  %v762_v61 = vpop.permute.xlu2 %761 }
 0x233   :  { %3015 = vst [vmem:[#allocation59_spill] sm:$0xff] %v2163_v43  ;;  %v2165_v46 = vpop.permute.xlu0 %692  ;;  %v790_v34 = vmul.f32 %v762_v61, %v2179_v57 }
 0x234   :  { %3016 = vst [vmem:[#allocation60_spill] sm:$0xff] %v2165_v46 }
 0x23a   :  { %v2169_v41 = vpop.permute.xlu1 %694  ;;  %v770_v54 = vpop.permute.xlu2 %769 }
 0x23b   :  { %3018 = vst [vmem:[#allocation62_spill] sm:$0xff] %v2169_v41  ;;  %v2171_v52 = vpop.permute.xlu0 %698 }
 0x23c   :  { %3019 = vst [vmem:[#allocation63_spill] sm:$0xff] %v2171_v52 }
 0x242   :  { %v2181_v17 = vpop.permute.xlu1 %700  ;;  %v782_v44 = vpop.permute.xlu2 %781 }
 0x243   :  { %3022 = vst [vmem:[#allocation66_spill] sm:$0xff] %v2181_v17  ;;  %v754_v27 = vpop.permute.xlu0 %753  ;;  %v791_v17 = vmul.f32 %v2174_v56, %v762_v61  ;;  %v801_v25 = vmul.f32 %v2174_v56, %v782_v44 }
 0x244   :  { %v786_v43 = vmul.f32 %v754_v27, %v2179_v57  ;;  %v787_v46 = vmul.f32 %v2174_v56, %v754_v27 }
 0x246   :  { %850 = vrot.lane.b32.xlu0 %v786_v43, %s1711_s1  ;;  %852 = vrot.lane.b32.xlu1 %v787_v46, %s1711_s1 }
 0x24a   :  { %v758_v52 = vpop.permute.xlu1 %757 }
 0x24b   :  { %v789_v11 = vmul.f32 %v2174_v56, %v758_v52  ;;  %v788_v35 = vmul.f32 %v758_v52, %v2179_v57  ;;  %v774_v53 = vpop.permute.xlu0 %773 }
 0x24d   :  { %854 = vrot.lane.b32.xlu2 %v788_v35, %s1711_s1  ;;  %v794_v35 = vmul.f32 %v770_v54, %v2179_v57 }
 0x24e   :  { %856 = vrot.lane.b32.xlu0 %v789_v11, %s1711_s1  ;;  %858 = vrot.lane.b32.xlu1 %v790_v34, %s1711_s1  ;;  %v796_v11 = vmul.f32 %v774_v53, %v2179_v57  ;;  %v795_v34 = vmul.f32 %v2174_v56, %v770_v54 }
 0x252   :  { %v766_v41 = vpop.permute.xlu1 %765 }
 0x253   :  { %v792_v43 = vmul.f32 %v766_v41, %v2179_v57  ;;  %v793_v46 = vmul.f32 %v2174_v56, %v766_v41 }
 0x255   :  { %860 = vrot.lane.b32.xlu2 %v791_v17, %s1711_s1  ;;  %v797_v17 = vmul.f32 %v2174_v56, %v774_v53 }
 0x256   :  { %862 = vrot.lane.b32.xlu0 %v792_v43, %s1711_s1  ;;  %864 = vrot.lane.b32.xlu1 %v793_v46, %s1711_s1 }
 0x25a   :  { %v778_v40 = vpop.permute.xlu1 %777 }
 0x25b   :  { %v799_v43 = vmul.f32 %v2174_v56, %v778_v40  ;;  %v798_v46 = vmul.f32 %v778_v40, %v2179_v57 }
 0x25d   :  { %866 = vrot.lane.b32.xlu2 %v794_v35, %s1711_s1  ;;  %v2212_v35 = vperm.slane %v1916_v13, 2 }
 0x25e   :  { %870 = vrot.lane.b32.xlu1 %v796_v11, %s1711_s1  ;;  %868 = vrot.lane.b32.xlu0 %v795_v34, %s1711_s1  ;;  %v800_v11 = vmul.f32 %v782_v44, %v2179_v57 }
 0x25f   :  { %3023 = vst [vmem:[#allocation67_spill] sm:$0xff] %v2212_v35  ;;  %v802_v34 = vmul.f32 %v754_v27, %v2212_v35 }
 0x265   :  { %872 = vrot.lane.b32.xlu2 %v797_v17, %s1711_s1  ;;  %v2221_v17 = vperm.slane %v1912_v12, 2  ;;  %v808_v12 = vmul.f32 %v766_v41, %v2212_v35 }
 0x266   :  { %876 = vrot.lane.b32.xlu1 %v799_v43, %s1711_s1  ;;  %874 = vrot.lane.b32.xlu0 %v798_v46, %s1711_s1  ;;  %v804_v46 = vmul.f32 %v758_v52, %v2212_v35 }
 0x267   :  { %3024 = vst [vmem:[#allocation68_spill] sm:$0xff] %v2221_v17  ;;  %v803_v43 = vmul.f32 %v2221_v17, %v754_v27  ;;  %v805_v13 = vmul.f32 %v2221_v17, %v758_v52  ;;  %v807_v27 = vmul.f32 %v2221_v17, %v762_v61  ;;  %v809_v52 = vmul.f32 %v2221_v17, %v766_v41 }
 0x268   :  { %v815_v41 = vmul.f32 %v2221_v17, %v778_v40 }
 0x26d   :  { %878 = vrot.lane.b32.xlu2 %v800_v11, %s1711_s1  ;;  %v1714_v11 = vmov 2  }
 0x26e   :  { %882 = vrot.lane.b32.xlu1 %v802_v34, %s1711_s1  ;;  %880 = vrot.lane.b32.xlu0 %v801_v25, %s1711_s1  ;;  %v806_v25 = vmul.f32 %v762_v61, %v2212_v35  ;;  %v811_v34 = vmul.f32 %v2221_v17, %v770_v54  ;;  %v812_v61 = vmul.f32 %v774_v53, %v2212_v35 }
 0x26f   :  { %1665 = vset.pattern.permute.xlu0 %v1714_v11  ;;  %1664 = vset.pattern.permute.xlu2 %v1714_v11 }
 0x270   :  { %1666 = vset.pattern.permute.xlu1 %v1714_v11  ;;  %v816_v11 = vmul.f32 %v782_v44, %v2212_v35 }
 0x275   :  { %884 = vrot.lane.b32.xlu2 %v803_v43, %s1711_s1  ;;  %v810_v43 = vmul.f32 %v770_v54, %v2212_v35  ;;  %v817_v54 = vmul.f32 %v2221_v17, %v782_v44 }
 0x276   :  { %888 = vrot.lane.b32.xlu1 %v805_v13, %s1711_s1  ;;  %886 = vrot.lane.b32.xlu0 %v804_v46, %s1711_s1  ;;  %v814_v13 = vmul.f32 %v778_v40, %v2212_v35  ;;  %v813_v46 = vmul.f32 %v2221_v17, %v774_v53 }
 0x27d   :  { %890 = vrot.lane.b32.xlu2 %v806_v25, %s1711_s1 }
 0x27e   :  { %894 = vrot.lane.b32.xlu1 %v808_v12, %s1711_s1  ;;  %892 = vrot.lane.b32.xlu0 %v807_v27, %s1711_s1 }
 0x285   :  { %896 = vrot.lane.b32.xlu2 %v809_v52, %s1711_s1 }
 0x286   :  { %900 = vrot.lane.b32.xlu1 %v811_v34, %s1711_s1  ;;  %898 = vrot.lane.b32.xlu0 %v810_v43, %s1711_s1 }
 0x28d   :  { %902 = vrot.lane.b32.xlu2 %v812_v61, %s1711_s1 }
 0x28e   :  { %906 = vrot.lane.b32.xlu1 %v814_v13, %s1711_s1  ;;  %904 = vrot.lane.b32.xlu0 %v813_v46, %s1711_s1 }
 0x295   :  { %908 = vrot.lane.b32.xlu2 %v815_v41, %s1711_s1 }
 0x296   :  { %912 = vrot.lane.b32.xlu1 %v817_v54, %s1711_s1  ;;  %910 = vrot.lane.b32.xlu0 %v816_v11, %s1711_s1 }
 0x29d   :  { %963 = vperm.xlu2 %1664, %v1754_v2  }
 0x29e   :  { %971 = vperm.xlu1 %1666, %v1749_v1   ;;  %967 = vperm.xlu0 %1665, %v1772_v6  }
 0x2a5   :  { %975 = vperm.xlu2 %1664, %v1767_v5  }
 0x2a6   :  { %979 = vperm.xlu1 %1666, %v1744_v0   ;;  %987 = vperm.xlu0 %1665, %v1785_v8  }
 0x2a7   :  { %v2259_v40 = vpop.permute.xlu2 %854 }
 0x2ad   :  { %983 = vperm.xlu2 %1664, %v1762_v4  }
 0x2ae   :  { %991 = vperm.xlu1 %1666, %v1780_v7  }
 0x2af   :  { %v2263_v44 = vpop.permute.xlu2 %860 }
 0x2b0   :  { %3025 = vst [vmem:[#allocation69_spill] sm:$0xff] %v2263_v44 }
 0x2b7   :  { %v867_v53 = vpop.permute.xlu2 %866 }
 0x2b8   :  { %v2265_v2 = vpop.permute.xlu0 %850  ;;  %v2267_v1 = vpop.permute.xlu1 %852 }
 0x2bf   :  { %v873_v6 = vpop.permute.xlu2 %872 }
 0x2c0   :  { %v2269_v25 = vpop.permute.xlu0 %856  ;;  %v2271_v5 = vpop.permute.xlu1 %858 }
 0x2c1   :  { %3026 = vst [vmem:[#allocation70_spill] sm:$0xff] %v2271_v5 }
 0x2c7   :  { %v879_v0 = vpop.permute.xlu2 %878 }
 0x2c8   :  { %v2273_v8 = vpop.permute.xlu0 %862  ;;  %v2275_v12 = vpop.permute.xlu1 %864 }
 0x2cf   :  { %v885_v4 = vpop.permute.xlu2 %884 }
 0x2d0   :  { %v871_v7 = vpop.permute.xlu1 %870  ;;  %v869_v27 = vpop.permute.xlu0 %868 }
 0x2d1   :  { %v2278_v52 = vsel %vm493_vm0, %v871_v7, %v873_v6  ;;  %v2281_v34 = vsel %vm493_vm0, %v867_v53, %v869_v27 }
 0x2d7   :  { %v891_v43 = vpop.permute.xlu2 %890 }
 0x2d8   :  { %v877_v61 = vpop.permute.xlu1 %876  ;;  %v875_v13 = vpop.permute.xlu0 %874 }
 0x2d9   :  { %v2284_v46 = vsel %vm493_vm0, %v875_v13, %v877_v61 }
 0x2df   :  { %v897_v41 = vpop.permute.xlu2 %896 }
 0x2e0   :  { %v883_v54 = vpop.permute.xlu1 %882  ;;  %v881_v11 = vpop.permute.xlu0 %880 }
 0x2e1   :  { %v2287_v17 = vsel %vm493_vm0, %v883_v54, %v885_v4  ;;  %v2290_v56 = vsel %vm493_vm0, %v879_v0, %v881_v11 }
 0x2e2   :  { %3027 = vst [vmem:[#allocation71_spill] sm:$0xff] %v2287_v17 }
 0x2e3   :  { %3028 = vst [vmem:[#allocation72_spill] sm:$0xff] %v2290_v56 }
 0x2e7   :  { %v903_v6 = vpop.permute.xlu2 %902 }
 0x2e8   :  { %v889_v7 = vpop.permute.xlu1 %888  ;;  %v887_v5 = vpop.permute.xlu0 %886 }
 0x2e9   :  { %v2293_v53 = vsel %vm493_vm0, %v887_v5, %v889_v7 }
 0x2ef   :  { %v909_v27 = vpop.permute.xlu2 %908 }
 0x2f0   :  { %v895_v44 = vpop.permute.xlu1 %894  ;;  %v893_v35 = vpop.permute.xlu0 %892 }
 0x2f1   :  { %v2296_v61 = vsel %vm493_vm0, %v895_v44, %v897_v41  ;;  %v2299_v13 = vsel %vm493_vm0, %v891_v43, %v893_v35 }
 0x2f2   :  { %3029 = vst [vmem:[#allocation73_spill] sm:$0xff] %v2296_v61 }
 0x2f7   :  { %v964_v4 = vpop.permute.xlu2 %963 }
 0x2f8   :  { %v901_v54 = vpop.permute.xlu1 %900  ;;  %v899_v17 = vpop.permute.xlu0 %898  ;;  %v994_v0 = vmul.f32 %v964_v4, %v1871_v38  ;;  %v995_v11 = vmul.f32 %v964_v4, %v1868_v37 }
 0x2f9   :  { %v2304_v56 = vsel %vm493_vm0, %v899_v17, %v901_v54 }
 0x2fa   :  { %3030 = vst [vmem:[#allocation74_spill] sm:$0xff] %v2304_v56  ;;  %1060 = vrot.lane.b32.xlu0 %v995_v11, %s1715_s8  ;;  %1058 = vrot.lane.b32.xlu2 %v994_v0, %s1715_s8 }
 0x300   :  { %v907_v44 = vpop.permute.xlu1 %906  ;;  %v905_v5 = vpop.permute.xlu0 %904 }
 0x301   :  { %v2309_v35 = vsel %vm493_vm0, %v907_v44, %v909_v27  ;;  %v2312_v43 = vsel %vm493_vm0, %v903_v6, %v905_v5  ;;  %v976_v6 = vpop.permute.xlu2 %975 }
 0x302   :  { %3031 = vst [vmem:[#allocation75_spill] sm:$0xff] %v2309_v35  ;;  %v1000_v44 = vmul.f32 %v976_v6, %v1871_v38  ;;  %v1001_v5 = vmul.f32 %v976_v6, %v1868_v37 }
 0x303   :  { %3032 = vst [vmem:[#allocation76_spill] sm:$0xff] %v2312_v43  ;;  %v1011_v43 = vmul.f32 %v964_v4, %v1920_v20 }
 0x308   :  { %v913_v41 = vpop.permute.xlu1 %912  ;;  %v911_v7 = vpop.permute.xlu0 %910 }
 0x309   :  { %v2315_v61 = vsel %vm493_vm0, %v911_v7, %v913_v41  ;;  %v984_v7 = vpop.permute.xlu2 %983 }
 0x30a   :  { %3033 = vst [vmem:[#allocation77_spill] sm:$0xff] %v2315_v61 }
 0x310   :  { %v972_v17 = vpop.permute.xlu1 %971  ;;  %v968_v54 = vpop.permute.xlu0 %967 }
 0x311   :  { %v996_v56 = vmul.f32 %v968_v54, %v1871_v38  ;;  %v997_v11 = vmul.f32 %v968_v54, %v1868_v37  ;;  %v998_v0 = vmul.f32 %v972_v17, %v1871_v38  ;;  %v999_v27 = vmul.f32 %v972_v17, %v1868_v37 }
 0x313   :  { %1062 = vrot.lane.b32.xlu1 %v996_v56, %s1715_s8  ;;  %1066 = vrot.lane.b32.xlu0 %v998_v0, %s1715_s8  ;;  %v1004_v0 = vmul.f32 %v984_v7, %v1871_v38 }
 0x314   :  { %1064 = vrot.lane.b32.xlu2 %v997_v11, %s1715_s8 }
 0x318   :  { %v980_v41 = vpop.permute.xlu1 %979  ;;  %v988_v61 = vpop.permute.xlu0 %987 }
 0x319   :  { %v1002_v56 = vmul.f32 %v980_v41, %v1871_v38  ;;  %v1003_v11 = vmul.f32 %v980_v41, %v1868_v37 }
 0x31b   :  { %1068 = vrot.lane.b32.xlu1 %v999_v27, %s1715_s8  ;;  %1072 = vrot.lane.b32.xlu0 %v1001_v5, %s1715_s8  ;;  %v1005_v27 = vmul.f32 %v984_v7, %v1868_v37  ;;  %v1006_v5 = vmul.f32 %v988_v61, %v1871_v38 }
 0x31c   :  { %1070 = vrot.lane.b32.xlu2 %v1000_v44, %s1715_s8  ;;  %v1007_v44 = vmul.f32 %v988_v61, %v1868_v37 }
 0x320   :  { %v992_v35 = vpop.permute.xlu1 %991 }
 0x323   :  { %1074 = vrot.lane.b32.xlu1 %v1002_v56, %s1715_s8  ;;  %1078 = vrot.lane.b32.xlu0 %v1004_v0, %s1715_s8  ;;  %v1008_v56 = vmul.f32 %v992_v35, %v1871_v38  ;;  %v1009_v0 = vmul.f32 %v992_v35, %v1868_v37  ;;  %v1014_v37 = vmul.f32 %v972_v17, %v1923_v30 }
 0x324   :  { %1076 = vrot.lane.b32.xlu2 %v1003_v11, %s1715_s8  ;;  %v1010_v11 = vmul.f32 %v964_v4, %v1923_v30  ;;  %v1015_v4 = vmul.f32 %v972_v17, %v1920_v20  ;;  %v1020_v17 = vmul.f32 %v984_v7, %v1923_v30 }
 0x32b   :  { %1080 = vrot.lane.b32.xlu1 %v1005_v27, %s1715_s8  ;;  %1084 = vrot.lane.b32.xlu0 %v1007_v44, %s1715_s8  ;;  %v1012_v27 = vmul.f32 %v968_v54, %v1923_v30  ;;  %v1716_v44 = vmov 5  }
 0x32c   :  { %1082 = vrot.lane.b32.xlu2 %v1006_v5, %s1715_s8  ;;  %v1013_v5 = vmul.f32 %v968_v54, %v1920_v20  ;;  %1667 = vset.pattern.permute.xlu1 %v1716_v44  ;;  %v1018_v54 = vmul.f32 %v980_v41, %v1923_v30 }
 0x32d   :  { %1669 = vset.pattern.permute.xlu0 %v1716_v44  ;;  %1668 = vset.pattern.permute.xlu2 %v1716_v44  ;;  %v167_v44 = vmul.f32 %v1871_v38, %v1827_v18 }
 0x333   :  { %1086 = vrot.lane.b32.xlu1 %v1008_v56, %s1715_s8  ;;  %1090 = vrot.lane.b32.xlu0 %v1010_v11, %s1715_s8  ;;  %v1016_v56 = vmul.f32 %v976_v6, %v1923_v30  ;;  %v1019_v11 = vmul.f32 %v980_v41, %v1920_v20  ;;  %v1024_v41 = vmul.f32 %v992_v35, %v1923_v30 }
 0x334   :  { %1088 = vrot.lane.b32.xlu2 %v1009_v0, %s1715_s8  ;;  %v1021_v0 = vmul.f32 %v984_v7, %v1920_v20  ;;  %v233_v7 = vmul.f32 %v2016_v42, %v1823_v16 }
 0x33b   :  { %1092 = vrot.lane.b32.xlu1 %v1011_v43, %s1715_s8  ;;  %1096 = vrot.lane.b32.xlu0 %v1013_v5, %s1715_s8  ;;  %v1017_v43 = vmul.f32 %v976_v6, %v1920_v20  ;;  %v1023_v6 = vmul.f32 %v988_v61, %v1920_v20  ;;  %v1025_v5 = vmul.f32 %v992_v35, %v1920_v20  ;;  %v2392_v35 = vld [vmem:[%s2941_s2 + $0x10] sm:$0xff] }
 0x33c   :  { %1094 = vrot.lane.b32.xlu2 %v1012_v27, %s1715_s8  ;;  %v1022_v27 = vmul.f32 %v988_v61, %v1923_v30  ;;  %v2386_v61 = vld [vmem:[%s2941_s2] sm:$0xff]  ;;  %v249_v20 = vadd.f32 %v233_v7, %v167_v44  ;;  %v2440_v7 = vld [vmem:[%s2941_s2 + $0x30] sm:$0xff] }
 0x343   :  { %1098 = vrot.lane.b32.xlu1 %v1014_v37, %s1715_s8  ;;  %1102 = vrot.lane.b32.xlu0 %v1016_v56, %s1715_s8  ;;  %v299_v37 = vmul.f32 %v2179_v57, %v1844_v26 }
 0x344   :  { %1100 = vrot.lane.b32.xlu2 %v1015_v4, %s1715_s8  ;;  %v2398_v4 = vld [vmem:[%s2941_s2 + $0x8] sm:$0xff] }
 0x34b   :  { %1104 = vrot.lane.b32.xlu1 %v1017_v43, %s1715_s8  ;;  %1108 = vrot.lane.b32.xlu0 %v1019_v11, %s1715_s8  ;;  %v494_v43 = vsel %vm493_vm0, %v1956_v59, %v1973_v9  ;;  %v704_v11 = vsel %vm493_vm0, %v2121_v24, %v2109_v47  ;;  %v2419_v9 = vld [vmem:[%s2941_s2 + $0x38] sm:$0xff]  ;;  %v2425_v24 = vld [vmem:[%s2941_s2 + $0x20] sm:$0xff] }
 0x34c   :  { %1106 = vrot.lane.b32.xlu2 %v1018_v54, %s1715_s8  ;;  %v315_v54 = vadd.f32 %v299_v37, %v249_v20  ;;  %v234_v37 = vmul.f32 %v2016_v42, %v1848_v28  ;;  %v168_v20 = vmul.f32 %v1871_v38, %v1836_v22 }
 0x353   :  { %1110 = vrot.lane.b32.xlu1 %v1020_v17, %s1715_s8  ;;  %1114 = vrot.lane.b32.xlu0 %v1022_v27, %s1715_s8  ;;  %v526_v17 = vadd.f32 %v494_v43, %v315_v54  ;;  %v250_v43 = vadd.f32 %v234_v37, %v168_v20  ;;  %v495_v54 = vsel %vm493_vm0, %v1975_v10, %v1963_v60 }
 0x354   :  { %1112 = vrot.lane.b32.xlu2 %v1021_v0, %s1715_s8  ;;  %v1059_v56 = vpop.permute.xlu2 %1058  ;;  %v914_v0 = vsel %vm493_vm0, %v2265_v2, %v2267_v1  ;;  %v302_v60 = vmul.f32 %v2179_v57, %v1850_v29 }
 0x355   :  { %v736_v27 = vadd.f32 %v704_v11, %v526_v17 }
 0x357   :  { %v946_v59 = vadd.f32 %v914_v0, %v736_v27  ;;  %v705_v0 = vsel %vm493_vm0, %v2119_v58, %v2123_v36 }
 0x35b   :  { %1116 = vrot.lane.b32.xlu1 %v1023_v6, %s1715_s8  ;;  %1120 = vrot.lane.b32.xlu0 %v1025_v5, %s1715_s8  ;;  %v2413_v6 = vld [vmem:[%s2941_s2 + $0x18] sm:$0xff]  ;;  %v2434_v5 = vld [vmem:[%s2941_s2 + $0x28] sm:$0xff]  ;;  %s1718_s2 = smov [#allocation4]  }
 0x35c   :  { %1118 = vrot.lane.b32.xlu2 %v1024_v41, %s1715_s8  ;;  %s1607_s25 = sshll.u32 %s1718_s2, 4  ;;  %s1608_s25 = int_to_ptr.vmem [resolvable:$true] %s1607_s25 }
 0x363   :  { %1172 = vperm.xlu1 %1667, %v2386_v61   ;;  %1180 = vperm.xlu0 %1669, %v2392_v35  }
 0x364   :  { %1176 = vperm.xlu2 %1668, %v2398_v4  }
 0x36b   :  { %1184 = vperm.xlu1 %1667, %v2413_v6   ;;  %1200 = vperm.xlu0 %1669, %v2419_v9  }
 0x36c   :  { %v1061_v47 = vpop.permute.xlu0 %1060  ;;  %1188 = vperm.xlu2 %1668, %v2425_v24  }
 0x36d   :  { %v1123_v2 = vsel %vm1122_vm1, %v1059_v56, %v1061_v47  ;;  %v300_v56 = vmul.f32 %v2179_v57, %v1873_v39  ;;  %v170_v47 = vmul.f32 %v1871_v38, %v1834_v21 }
 0x36e   :  { %v2429_v1 = vadd.f32 %v1123_v2, %v946_v59  ;;  %v1065_v41 = vpop.permute.xlu2 %1064  ;;  %v236_v59 = vmul.f32 %v2016_v42, %v1829_v19  ;;  %v915_v2 = vsel %vm493_vm0, %v2259_v40, %v2269_v25  ;;  %v237_v40 = vmul.f32 %v2016_v42, %v1855_v31 }
 0x36f   :  { %v316_v17 = vadd.f32 %v300_v56, %v250_v43  ;;  %v707_v25 = vsel %vm493_vm0, %v2129_v55, %v2117_v50 }
 0x370   :  { %3034 = vst [vmem:[#allocation78_spill] sm:$0xff] %v2429_v1  ;;  %v252_v56 = vadd.f32 %v236_v59, %v170_v47 }
 0x371   :  { %v527_v27 = vadd.f32 %v495_v54, %v316_v17  ;;  %v497_v54 = vsel %vm493_vm0, %v1969_v63, %v1985_v48  ;;  %v917_v63 = vsel %vm493_vm0, %v2273_v8, %v2275_v12  ;;  %v708_v8 = vsel %vm493_vm0, %v2131_v49, %v2135_v62  ;;  %v3037_v49 = vld [vmem:[#allocation13_spill] sm:$0xff] }
 0x372   :  { %v318_v1 = vadd.f32 %v302_v60, %v252_v56  ;;  %v305_v62 = vmul.f32 %v2179_v57, %v3037_v49 }
 0x373   :  { %1192 = vperm.xlu1 %1667, %v2434_v5   ;;  %v737_v37 = vadd.f32 %v705_v0, %v527_v27  ;;  %v303_v27 = vmul.f32 %v2179_v57, %v1883_v45 }
 0x374   :  { %1196 = vperm.xlu2 %1668, %v2440_v7   ;;  %v529_v0 = vadd.f32 %v497_v54, %v318_v1 }
 0x375   :  { %v947_v10 = vadd.f32 %v915_v2, %v737_v37  ;;  %v498_v2 = vsel %vm493_vm0, %v1987_v51, %v1971_v3  ;;  %v239_v3 = vmul.f32 %v2016_v42, %v1857_v32  ;;  %v172_v51 = vmul.f32 %v1871_v38, %v1821_v15 }
 0x376   :  { %v1071_v44 = vpop.permute.xlu2 %1070  ;;  %v739_v48 = vadd.f32 %v707_v25, %v529_v0 }
 0x378   :  { %v949_v37 = vadd.f32 %v917_v63, %v739_v48  ;;  %v3039_v63 = vld [vmem:[#allocation20_spill] sm:$0xff] }
 0x37e   :  { %v1077_v11 = vpop.permute.xlu2 %1076 }
 0x385   :  { %v1063_v20 = vpop.permute.xlu1 %1062  ;;  %v1067_v36 = vpop.permute.xlu0 %1066 }
 0x386   :  { %v1124_v58 = vsel %vm1122_vm1, %v1063_v20, %v1065_v41  ;;  %v1083_v43 = vpop.permute.xlu2 %1082  ;;  %v171_v41 = vmul.f32 %v1871_v38, %v1818_v14  ;;  %v238_v20 = vmul.f32 %v2016_v42, %v1838_v23 }
 0x387   :  { %v2468_v17 = vadd.f32 %v1124_v58, %v947_v10  ;;  %v304_v58 = vmul.f32 %v2179_v57, %v1859_v33 }
 0x388   :  { %v253_v59 = vadd.f32 %v237_v40, %v171_v41  ;;  %v254_v40 = vadd.f32 %v238_v20, %v172_v51  ;;  %v3045_v51 = vld [vmem:[#allocation11_spill] sm:$0xff] }
 0x38a   :  { %v319_v60 = vadd.f32 %v303_v27, %v253_v59  ;;  %v3038_v27 = vld [vmem:[#allocation21_spill] sm:$0xff] }
 0x38b   :  { %v499_v48 = vsel %vm493_vm0, %v3039_v63, %v3038_v27 }
 0x38c   :  { %v530_v56 = vadd.f32 %v498_v2, %v319_v60  ;;  %v3041_v60 = vld [vmem:[#allocation15_spill] sm:$0xff] }
 0x38d   :  { %v1069_v47 = vpop.permute.xlu1 %1068  ;;  %v1073_v55 = vpop.permute.xlu0 %1072 }
 0x38e   :  { %v2486_v50 = vsel %vm1122_vm1, %v1067_v36, %v1069_v47  ;;  %v1089_v1 = vpop.permute.xlu2 %1088  ;;  %v1126_v10 = vsel %vm1122_vm1, %v1071_v44, %v1073_v55  ;;  %v740_v44 = vadd.f32 %v708_v8, %v530_v56  ;;  %v3036_v36 = vld [vmem:[#allocation9_spill] sm:$0xff]  ;;  %v3040_v55 = vld [vmem:[#allocation23_spill] sm:$0xff] }
 0x38f   :  { %v2492_v12 = vadd.f32 %v1126_v10, %v949_v37  ;;  %v173_v54 = vmul.f32 %v1871_v38, %v3036_v36  ;;  %v320_v37 = vadd.f32 %v304_v58, %v254_v40  ;;  %v500_v10 = vsel %vm493_vm0, %v3041_v60, %v3040_v55  ;;  %v3044_v56 = vld [vmem:[#allocation43_spill] sm:$0xff]  ;;  %v3048_v40 = vld [vmem:[#allocation8_spill] sm:$0xff]  ;;  %v3049_v55 = vld [vmem:[#allocation14_spill] sm:$0xff] }
 0x390   :  { %v950_v25 = vadd.f32 %v2281_v34, %v740_v44  ;;  %v3043_v34 = vld [vmem:[#allocation46_spill] sm:$0xff]  ;;  %v240_v44 = vmul.f32 %v2016_v42, %v3045_v51  ;;  %v174_v63 = vmul.f32 %v1871_v38, %v3048_v40 }
 0x391   :  { %3035 = vst [vmem:[#allocation79_spill] sm:$0xff] %v2492_v12  ;;  %v255_v41 = vadd.f32 %v239_v3, %v173_v54  ;;  %v709_v3 = vsel %vm493_vm0, %v3044_v56, %v3043_v34  ;;  %v531_v54 = vadd.f32 %v499_v48, %v320_v37  ;;  %v3050_v56 = vld [vmem:[#allocation18_spill] sm:$0xff] }
 0x393   :  { %v321_v20 = vadd.f32 %v305_v62, %v255_v41  ;;  %v741_v62 = vadd.f32 %v709_v3, %v531_v54  ;;  %v3052_v54 = vld [vmem:[#allocation51_spill] sm:$0xff] }
 0x395   :  { %v1075_v0 = vpop.permute.xlu1 %1074  ;;  %v1079_v47 = vpop.permute.xlu0 %1078  ;;  %v532_v58 = vadd.f32 %v500_v10, %v321_v20  ;;  %v951_v60 = vadd.f32 %v2278_v52, %v741_v62 }
 0x396   :  { %v1127_v59 = vsel %vm1122_vm1, %v1075_v0, %v1077_v11  ;;  %v2511_v2 = vpop.permute.xlu2 %1094  ;;  %v3046_v11 = vld [vmem:[#allocation45_spill] sm:$0xff]  ;;  %v3047_v0 = vld [vmem:[#allocation48_spill] sm:$0xff] }
 0x397   :  { %v2516_v8 = vadd.f32 %v1127_v59, %v950_v25  ;;  %v710_v27 = vsel %vm493_vm0, %v3047_v0, %v3046_v11  ;;  %v306_v25 = vmul.f32 %v2179_v57, %v3049_v55  ;;  %v256_v59 = vadd.f32 %v240_v44, %v174_v63  ;;  %v3053_v44 = vld [vmem:[#allocation49_spill] sm:$0xff] }
 0x398   :  { %v742_v41 = vadd.f32 %v710_v27, %v532_v58  ;;  %v711_v52 = vsel %vm493_vm0, %v3053_v44, %v3052_v54  ;;  %v3054_v58 = vld [vmem:[#allocation41_spill] sm:$0xff] }
 0x399   :  { %3042 = vst [vmem:[#allocation9_spill] sm:$0xff] %v2516_v8  ;;  %v3051_v8 = vld [vmem:[#allocation24_spill] sm:$0xff]  ;;  %v322_v0 = vadd.f32 %v306_v25, %v256_v59  ;;  %v242_v63 = vmul.f32 %v3054_v58, %v1848_v28  ;;  %v3055_v25 = vld [vmem:[#allocation67_spill] sm:$0xff] }
 0x39a   :  { %v501_v48 = vsel %vm493_vm0, %v3051_v8, %v3050_v56  ;;  %v952_v37 = vadd.f32 %v2284_v46, %v742_v41  ;;  %v241_v8 = vmul.f32 %v3054_v58, %v1823_v16  ;;  %v175_v46 = vmul.f32 %v1923_v30, %v1827_v18  ;;  %v3057_v18 = vld [vmem:[#allocation27_spill] sm:$0xff] }
 0x39b   :  { %v307_v62 = vmul.f32 %v3055_v25, %v1844_v26  ;;  %v176_v41 = vmul.f32 %v1923_v30, %v1836_v22  ;;  %v308_v59 = vmul.f32 %v3055_v25, %v1873_v39  ;;  %v3060_v22 = vld [vmem:[#allocation19_spill] sm:$0xff] }
 0x39d   :  { %v1081_v34 = vpop.permute.xlu1 %1080  ;;  %v1085_v20 = vpop.permute.xlu0 %1084 }
 0x39e   :  { %v1128_v10 = vsel %vm1122_vm1, %v1079_v47, %v1081_v34  ;;  %v1101_v11 = vpop.permute.xlu2 %1100  ;;  %v1129_v3 = vsel %vm1122_vm1, %v1083_v43, %v1085_v20  ;;  %v533_v47 = vadd.f32 %v501_v48, %v322_v0  ;;  %v3056_v34 = vld [vmem:[#allocation72_spill] sm:$0xff]  ;;  %v3058_v48 = vld [vmem:[#allocation26_spill] sm:$0xff] }
 0x39f   :  { %v2536_v12 = vadd.f32 %v1128_v10, %v951_v60  ;;  %v2542_v27 = vadd.f32 %v1129_v3, %v952_v37  ;;  %v257_v60 = vadd.f32 %v241_v8, %v175_v46  ;;  %v258_v37 = vadd.f32 %v242_v63, %v176_v41  ;;  %v3059_v3 = vld [vmem:[#allocation29_spill] sm:$0xff]  ;;  %v3063_v8 = vld [vmem:[#allocation47_spill] sm:$0xff] }
 0x3a0   :  { %v743_v43 = vadd.f32 %v711_v52, %v533_v47  ;;  %v502_v10 = vsel %vm493_vm0, %v3058_v48, %v3057_v18  ;;  %v503_v54 = vsel %vm493_vm0, %v3060_v22, %v3059_v3  ;;  %v3062_v52 = vld [vmem:[#allocation52_spill] sm:$0xff]  ;;  %v3064_v47 = vld [vmem:[#allocation10_spill] sm:$0xff]  ;;  %v3066_v41 = vld [vmem:[#allocation53_spill] sm:$0xff] }
 0x3a1   :  { %v323_v0 = vadd.f32 %v307_v62, %v257_v60  ;;  %v324_v44 = vadd.f32 %v308_v59, %v258_v37  ;;  %v712_v46 = vsel %vm493_vm0, %v3063_v8, %v3062_v52  ;;  %v243_v63 = vmul.f32 %v3054_v58, %v3064_v47  ;;  %v3067_v60 = vld [vmem:[#allocation7_spill] sm:$0xff]  ;;  %v3068_v18 = vld [vmem:[#allocation12_spill] sm:$0xff]  ;;  %v3070_v52 = vld [vmem:[#allocation22_spill] sm:$0xff] }
 0x3a2   :  { %v953_v16 = vadd.f32 %v3056_v34, %v743_v43  ;;  %v3071_v8 = vld [vmem:[#allocation30_spill] sm:$0xff] }
 0x3a3   :  { %v534_v43 = vadd.f32 %v502_v10, %v323_v0  ;;  %v535_v62 = vadd.f32 %v503_v54, %v324_v44  ;;  %v504_v10 = vsel %vm493_vm0, %v3071_v8, %v3070_v52  ;;  %v3075_v52 = vld [vmem:[#allocation32_spill] sm:$0xff] }
 0x3a5   :  { %v1087_v56 = vpop.permute.xlu1 %1086  ;;  %v1091_v20 = vpop.permute.xlu0 %1090  ;;  %v744_v59 = vadd.f32 %v712_v46, %v534_v43  ;;  %v3073_v43 = vld [vmem:[#allocation55_spill] sm:$0xff] }
 0x3a6   :  { %v1130_v28 = vsel %vm1122_vm1, %v1087_v56, %v1089_v1  ;;  %v2561_v26 = vpop.permute.xlu2 %1106  ;;  %v3065_v1 = vld [vmem:[#allocation50_spill] sm:$0xff]  ;;  %v177_v56 = vmul.f32 %v1923_v30, %v3067_v60 }
 0x3a7   :  { %v2566_v39 = vadd.f32 %v1130_v28, %v953_v16  ;;  %v713_v34 = vsel %vm493_vm0, %v3066_v41, %v3065_v1  ;;  %v309_v16 = vmul.f32 %v3055_v25, %v3068_v18  ;;  %v3069_v28 = vld [vmem:[#allocation71_spill] sm:$0xff] }
 0x3a8   :  { %v745_v37 = vadd.f32 %v713_v34, %v535_v62  ;;  %v259_v48 = vadd.f32 %v243_v63, %v177_v56  ;;  %v954_v3 = vadd.f32 %v3069_v28, %v744_v59  ;;  %v3072_v63 = vld [vmem:[#allocation56_spill] sm:$0xff]  ;;  %v310_v59 = vmul.f32 %v3055_v25, %v1850_v29 }
 0x3a9   :  { %3061 = vst [vmem:[#allocation13_spill] sm:$0xff] %v2566_v39  ;;  %v714_v34 = vsel %vm493_vm0, %v3073_v43, %v3072_v63  ;;  %v246_v43 = vmul.f32 %v3054_v58, %v1838_v23  ;;  %v3084_v23 = vld [vmem:[#allocation35_spill] sm:$0xff] }
 0x3aa   :  { %v955_v0 = vadd.f32 %v2293_v53, %v745_v37  ;;  %v325_v41 = vadd.f32 %v309_v16, %v259_v48  ;;  %v244_v53 = vmul.f32 %v3054_v58, %v1829_v19  ;;  %v245_v16 = vmul.f32 %v3054_v58, %v1855_v31 }
 0x3ab   :  { %v179_v37 = vmul.f32 %v1923_v30, %v1818_v14  ;;  %v311_v48 = vmul.f32 %v3055_v25, %v1883_v45 }
 0x3ac   :  { %v536_v56 = vadd.f32 %v504_v10, %v325_v41 }
 0x3ad   :  { %v1093_v22 = vpop.permute.xlu1 %1092  ;;  %v1097_v44 = vpop.permute.xlu0 %1096 }
 0x3ae   :  { %v1131_v54 = vsel %vm1122_vm1, %v1091_v20, %v1093_v22  ;;  %v2586_v1 = vpop.permute.xlu2 %1112  ;;  %v1132_v46 = vsel %vm1122_vm1, %v2511_v2, %v1097_v44  ;;  %v178_v20 = vmul.f32 %v1923_v30, %v1834_v21  ;;  %v746_v2 = vadd.f32 %v714_v34, %v536_v56  ;;  %v3074_v21 = vld [vmem:[#allocation33_spill] sm:$0xff] }
 0x3af   :  { %v2588_v39 = vadd.f32 %v1131_v54, %v954_v3  ;;  %v2595_v62 = vadd.f32 %v1132_v46, %v955_v0  ;;  %v261_v22 = vadd.f32 %v245_v16, %v179_v37  ;;  %v505_v8 = vsel %vm493_vm0, %v3075_v52, %v3074_v21  ;;  %v3076_v54 = vld [vmem:[#allocation34_spill] sm:$0xff]  ;;  %v3077_v44 = vld [vmem:[#allocation25_spill] sm:$0xff] }
 0x3b0   :  { %v260_v28 = vadd.f32 %v244_v53, %v178_v20  ;;  %v956_v19 = vadd.f32 %v2299_v13, %v746_v2  ;;  %v506_v14 = vsel %vm493_vm0, %v3077_v44, %v3076_v54  ;;  %v3078_v46 = vld [vmem:[#allocation57_spill] sm:$0xff]  ;;  %v3079_v13 = vld [vmem:[#allocation54_spill] sm:$0xff]  ;;  %v180_v16 = vmul.f32 %v1923_v30, %v1821_v15 }
 0x3b1   :  { %v327_v45 = vadd.f32 %v311_v48, %v261_v22  ;;  %v715_v63 = vsel %vm493_vm0, %v3079_v13, %v3078_v46  ;;  %v3080_v53 = vld [vmem:[#allocation58_spill] sm:$0xff]  ;;  %v3083_v22 = vld [vmem:[#allocation28_spill] sm:$0xff] }
 0x3b2   :  { %v326_v0 = vadd.f32 %v310_v59, %v260_v28  ;;  %v312_v59 = vmul.f32 %v3055_v25, %v1859_v33  ;;  %v262_v48 = vadd.f32 %v246_v43, %v180_v16  ;;  %v3082_v28 = vld [vmem:[#allocation73_spill] sm:$0xff]  ;;  %v507_v21 = vsel %vm493_vm0, %v3084_v23, %v3083_v22  ;;  %v3085_v52 = vld [vmem:[#allocation74_spill] sm:$0xff]  ;;  %v3087_v46 = vld [vmem:[#allocation60_spill] sm:$0xff] }
 0x3b3   :  { %v538_v56 = vadd.f32 %v506_v14, %v327_v45  ;;  %v3086_v45 = vld [vmem:[#allocation62_spill] sm:$0xff]  ;;  %v3088_v16 = vld [vmem:[#allocation76_spill] sm:$0xff]  ;;  %v3092_v22 = vld [vmem:[#allocation31_spill] sm:$0xff] }
 0x3b4   :  { %v537_v34 = vadd.f32 %v505_v8, %v326_v0  ;;  %v328_v15 = vadd.f32 %v312_v59, %v262_v48  ;;  %v717_v13 = vsel %vm493_vm0, %v3087_v46, %v3086_v45  ;;  %v3089_v48 = vld [vmem:[#allocation37_spill] sm:$0xff]  ;;  %v3093_v23 = vld [vmem:[#allocation63_spill] sm:$0xff] }
 0x3b5   :  { %v1099_v3 = vpop.permute.xlu1 %1098  ;;  %v1103_v10 = vpop.permute.xlu0 %1102  ;;  %v3097_v45 = vld [vmem:[#allocation75_spill] sm:$0xff] }
 0x3b6   :  { %v1133_v31 = vsel %vm1122_vm1, %v1099_v3, %v1101_v11  ;;  %v1119_v29 = vpop.permute.xlu2 %1118  ;;  %v3081_v11 = vld [vmem:[#allocation59_spill] sm:$0xff]  ;;  %v747_v2 = vadd.f32 %v715_v63, %v537_v34  ;;  %v539_v43 = vadd.f32 %v507_v21, %v328_v15  ;;  %v248_v34 = vmul.f32 %v3054_v58, %v3045_v51  ;;  %v3090_v51 = vld [vmem:[#allocation36_spill] sm:$0xff]  ;;  %v3094_v21 = vld [vmem:[#allocation61_spill] sm:$0xff] }
 0x3b7   :  { %v2617_v41 = vadd.f32 %v1133_v31, %v956_v19  ;;  %v716_v20 = vsel %vm493_vm0, %v3081_v11, %v3080_v53  ;;  %v313_v53 = vmul.f32 %v3055_v25, %v3037_v49 }
 0x3b8   :  { %v748_v37 = vadd.f32 %v716_v20, %v538_v56  ;;  %v957_v19 = vadd.f32 %v3082_v28, %v747_v2  ;;  %v749_v11 = vadd.f32 %v717_v13, %v539_v43  ;;  %v182_v20 = vmul.f32 %v1923_v30, %v3048_v40 }
 0x3b9   :  { %v314_v56 = vmul.f32 %v3055_v25, %v3049_v55  ;;  %v508_v28 = vsel %vm493_vm0, %v3090_v51, %v3089_v48 }
 0x3ba   :  { %v958_v8 = vadd.f32 %v3085_v52, %v748_v37  ;;  %v959_v59 = vadd.f32 %v3088_v16, %v749_v11  ;;  %v264_v37 = vadd.f32 %v248_v34, %v182_v20  ;;  %v718_v52 = vsel %vm493_vm0, %v3094_v21, %v3093_v23  ;;  %v3099_v16 = vld [vmem:[#allocation38_spill] sm:$0xff] }
 0x3bc   :  { %v330_v55 = vadd.f32 %v314_v56, %v264_v37 }
 0x3bd   :  { %v1105_v3 = vpop.permute.xlu1 %1104  ;;  %v1109_v0 = vpop.permute.xlu0 %1108 }
 0x3be   :  { %v1134_v31 = vsel %vm1122_vm1, %v1103_v10, %v1105_v3  ;;  %v2637_v54 = vpop.permute.xlu2 %1176  ;;  %v1135_v33 = vsel %vm1122_vm1, %v2561_v26, %v1109_v0  ;;  %v247_v10 = vmul.f32 %v3054_v58, %v1857_v32  ;;  %v181_v26 = vmul.f32 %v1923_v30, %v3036_v36  ;;  %v3091_v3 = vld [vmem:[#allocation39_spill] sm:$0xff]  ;;  %v3096_v0 = vld [vmem:[#allocation66_spill] sm:$0xff] }
 0x3bf   :  { %v2639_v44 = vadd.f32 %v1134_v31, %v957_v19  ;;  %v1205_v14 = vmul.f32 %v2637_v54, %v2016_v42  ;;  %v2648_v63 = vadd.f32 %v1135_v33, %v958_v8  ;;  %v509_v30 = vsel %vm493_vm0, %v3092_v22, %v3091_v3  ;;  %v3095_v31 = vld [vmem:[#allocation65_spill] sm:$0xff] }
 0x3c0   :  { %v263_v32 = vadd.f32 %v247_v10, %v181_v26  ;;  %v719_v15 = vsel %vm493_vm0, %v3096_v0, %v3095_v31  ;;  %v541_v33 = vadd.f32 %v509_v30, %v330_v55  ;;  %v3098_v10 = vld [vmem:[#allocation77_spill] sm:$0xff]  ;;  %v3100_v0 = vld [vmem:[#allocation40_spill] sm:$0xff] }
 0x3c1   :  { %1271 = vrot.lane.b32.xlu0 %v1205_v14, %s1715_s8 }
 0x3c2   :  { %v329_v19 = vadd.f32 %v313_v53, %v263_v32  ;;  %v751_v14 = vadd.f32 %v719_v15, %v541_v33  ;;  %v1717_v33 = vmov 8  }
 0x3c3   :  { %1670 = vset.pattern.permute.xlu0 %v1717_v33  ;;  %1671 = vset.pattern.permute.xlu1 %v1717_v33 }
 0x3c4   :  { %v540_v8 = vadd.f32 %v508_v28, %v329_v19  ;;  %v961_v43 = vadd.f32 %v3098_v10, %v751_v14  ;;  %1672 = vset.pattern.permute.xlu2 %v1717_v33 }
 0x3c5   :  { %v1111_v2 = vpop.permute.xlu1 %1110  ;;  %v1115_v49 = vpop.permute.xlu0 %1114 }
 0x3c6   :  { %v1136_v36 = vsel %vm1122_vm1, %v1111_v2, %v2586_v1  ;;  %v750_v1 = vadd.f32 %v718_v52, %v540_v8  ;;  %v1189_v28 = vpop.permute.xlu2 %1188 }
 0x3c7   :  { %v2672_v40 = vadd.f32 %v1136_v36, %v959_v59  ;;  %v1211_v36 = vmul.f32 %v1189_v28, %v2016_v42  ;;  %v1212_v55 = vmul.f32 %v1189_v28, %v3099_v16 }
 0x3c8   :  { %v960_v46 = vadd.f32 %v3097_v45, %v750_v1 }
 0x3cd   :  { %v1117_v13 = vpop.permute.xlu1 %1116  ;;  %v1121_v26 = vpop.permute.xlu0 %1120 }
 0x3ce   :  { %v1137_v34 = vsel %vm1122_vm1, %v1115_v49, %v1117_v13  ;;  %v1138_v11 = vsel %vm1122_vm1, %v1119_v29, %v1121_v26  ;;  %v1206_v29 = vmul.f32 %v2637_v54, %v3099_v16  ;;  %v1197_v52 = vpop.permute.xlu2 %1196  ;;  %v1222_v13 = vmul.f32 %v2637_v54, %v3100_v0 }
 0x3cf   :  { %v2683_v53 = vadd.f32 %v1137_v34, %v960_v46  ;;  %v2686_v20 = vadd.f32 %v1138_v11, %v961_v43  ;;  %v1215_v8 = vmul.f32 %v1197_v52, %v2016_v42  ;;  %v1216_v31 = vmul.f32 %v1197_v52, %v3099_v16 }
 0x3d0   :  { %v1221_v46 = vmul.f32 %v2637_v54, %v3054_v58  ;;  %v1227_v54 = vmul.f32 %v1189_v28, %v3054_v58  ;;  %v1228_v11 = vmul.f32 %v1189_v28, %v3100_v0 }
 0x3d5   :  { %v1173_v56 = vpop.permute.xlu1 %1172  ;;  %v1181_v2 = vpop.permute.xlu0 %1180 }
 0x3d6   :  { %v1203_v32 = vmul.f32 %v1173_v56, %v2016_v42  ;;  %v1204_v59 = vmul.f32 %v1173_v56, %v3099_v16  ;;  %v1208_v37 = vmul.f32 %v1181_v2, %v3099_v16  ;;  %v1207_v48 = vmul.f32 %v1181_v2, %v2016_v42 }
 0x3d7   :  { %v1220_v15 = vmul.f32 %v1173_v56, %v3100_v0  ;;  %v1219_v1 = vmul.f32 %v1173_v56, %v3054_v58  ;;  %v1223_v45 = vmul.f32 %v1181_v2, %v3054_v58  ;;  %v1224_v43 = vmul.f32 %v1181_v2, %v3100_v0 }
 0x3d8   :  { %1269 = vrot.lane.b32.xlu2 %v1204_v59, %s1715_s8  ;;  %1267 = vrot.lane.b32.xlu1 %v1203_v32, %s1715_s8  ;;  %v1232_v56 = vmul.f32 %v1197_v52, %v3100_v0  ;;  %v1231_v32 = vmul.f32 %v1197_v52, %v3054_v58 }
 0x3d9   :  { %1277 = vrot.lane.b32.xlu0 %v1208_v37, %s1715_s8 }
 0x3dd   :  { %v1185_v51 = vpop.permute.xlu1 %1184  ;;  %v1201_v30 = vpop.permute.xlu0 %1200 }
 0x3de   :  { %v1209_v19 = vmul.f32 %v1185_v51, %v2016_v42  ;;  %v1210_v3 = vmul.f32 %v1185_v51, %v3099_v16  ;;  %v1217_v21 = vmul.f32 %v1201_v30, %v2016_v42  ;;  %v1218_v14 = vmul.f32 %v1201_v30, %v3099_v16 }
 0x3df   :  { %v1226_v10 = vmul.f32 %v1185_v51, %v3100_v0  ;;  %v1225_v34 = vmul.f32 %v1185_v51, %v3054_v58  ;;  %v1233_v59 = vmul.f32 %v1201_v30, %v3054_v58  ;;  %v1234_v2 = vmul.f32 %v1201_v30, %v3100_v0 }
 0x3e0   :  { %1275 = vrot.lane.b32.xlu2 %v1207_v48, %s1715_s8  ;;  %1273 = vrot.lane.b32.xlu1 %v1206_v29, %s1715_s8  ;;  %v169_v48 = vmul.f32 %v1871_v38, %v3067_v60  ;;  %v301_v51 = vmul.f32 %v2179_v57, %v3068_v18  ;;  %v3105_v60 = vld [vmem:[#allocation69_spill] sm:$0xff] }
 0x3e1   :  { %1283 = vrot.lane.b32.xlu0 %v1211_v36, %s1715_s8  ;;  %v3103_v36 = vld [vmem:[#allocation44_spill] sm:$0xff] }
 0x3e5   :  { %v1193_v49 = vpop.permute.xlu1 %1192 }
 0x3e6   :  { %v1214_v22 = vmul.f32 %v1193_v49, %v3099_v16  ;;  %v1213_v23 = vmul.f32 %v1193_v49, %v2016_v42  ;;  %v1229_v26 = vmul.f32 %v1193_v49, %v3054_v58  ;;  %v1230_v16 = vmul.f32 %v1193_v49, %v3100_v0  ;;  %v3106_v49 = vld [vmem:[#allocation70_spill] sm:$0xff] }
 0x3e7   :  { %v235_v58 = vmul.f32 %v2016_v42, %v3064_v47  ;;  %v3104_v42 = vld [vmem:[#allocation42_spill] sm:$0xff]  ;;  %v916_v18 = vsel %vm493_vm0, %v3106_v49, %v3105_v60 }
 0x3e8   :  { %1281 = vrot.lane.b32.xlu2 %v1210_v3, %s1715_s8  ;;  %1279 = vrot.lane.b32.xlu1 %v1209_v19, %s1715_s8  ;;  %v706_v47 = vsel %vm493_vm0, %v3104_v42, %v3103_v36 }
 0x3e9   :  { %1289 = vrot.lane.b32.xlu0 %v1214_v22, %s1715_s8 }
 0x3f0   :  { %1287 = vrot.lane.b32.xlu2 %v1213_v23, %s1715_s8  ;;  %1285 = vrot.lane.b32.xlu1 %v1212_v55, %s1715_s8  ;;  %v3107_v23 = vld [vmem:[#allocation78_spill] sm:$0xff] }
 0x3f1   :  { %1295 = vrot.lane.b32.xlu0 %v1217_v21, %s1715_s8 }
 0x3f8   :  { %1293 = vrot.lane.b32.xlu2 %v1216_v31, %s1715_s8  ;;  %1291 = vrot.lane.b32.xlu1 %v1215_v8, %s1715_s8 }
 0x3f9   :  { %1301 = vrot.lane.b32.xlu0 %v1220_v15, %s1715_s8 }
 0x400   :  { %1299 = vrot.lane.b32.xlu2 %v1219_v1, %s1715_s8  ;;  %1297 = vrot.lane.b32.xlu1 %v1218_v14, %s1715_s8 }
 0x401   :  { %1307 = vrot.lane.b32.xlu0 %v1223_v45, %s1715_s8 }
 0x408   :  { %1305 = vrot.lane.b32.xlu2 %v1222_v13, %s1715_s8  ;;  %1303 = vrot.lane.b32.xlu1 %v1221_v46, %s1715_s8  ;;  %v3108_v46 = vld [vmem:[#allocation79_spill] sm:$0xff] }
 0x409   :  { %1313 = vrot.lane.b32.xlu0 %v1226_v10, %s1715_s8 }
 0x410   :  { %1311 = vrot.lane.b32.xlu2 %v1225_v34, %s1715_s8  ;;  %1309 = vrot.lane.b32.xlu1 %v1224_v43, %s1715_s8 }
 0x411   :  { %1319 = vrot.lane.b32.xlu0 %v1229_v26, %s1715_s8 }
 0x418   :  { %1317 = vrot.lane.b32.xlu2 %v1228_v11, %s1715_s8  ;;  %1315 = vrot.lane.b32.xlu1 %v1227_v54, %s1715_s8 }
 0x419   :  { %1325 = vrot.lane.b32.xlu0 %v1232_v56, %s1715_s8 }
 0x420   :  { %1323 = vrot.lane.b32.xlu2 %v1231_v32, %s1715_s8  ;;  %1321 = vrot.lane.b32.xlu1 %v1230_v16, %s1715_s8 }
 0x421   :  { %1380 = vperm.xlu0 %1670, %v2386_v61  }
 0x428   :  { %1329 = vrot.lane.b32.xlu2 %v1234_v2, %s1715_s8  ;;  %1327 = vrot.lane.b32.xlu1 %v1233_v59, %s1715_s8 }
 0x429   :  { %1400 = vperm.xlu0 %1670, %v2434_v5   ;;  %v3101_v5 = vld [vmem:[#allocation17_spill] sm:$0xff] }
 0x430   :  { %1384 = vperm.xlu1 %1671, %v2398_v4   ;;  %1388 = vperm.xlu2 %1672, %v2392_v35   ;;  %v251_v35 = vadd.f32 %v235_v58, %v169_v48 }
 0x432   :  { %v1270_v37 = vpop.permute.xlu2 %1269  ;;  %v317_v28 = vadd.f32 %v301_v51, %v251_v35 }
 0x433   :  { %v1272_v4 = vpop.permute.xlu0 %1271 }
 0x438   :  { %1392 = vperm.xlu1 %1671, %v2413_v6   ;;  %1396 = vperm.xlu2 %1672, %v2425_v24   ;;  %v3102_v6 = vld [vmem:[#allocation16_spill] sm:$0xff] }
 0x439   :  { %v496_v24 = vsel %vm493_vm0, %v3102_v6, %v3101_v5 }
 0x43a   :  { %v1276_v61 = vpop.permute.xlu2 %1275  ;;  %v528_v38 = vadd.f32 %v496_v24, %v317_v28 }
 0x440   :  { %1404 = vperm.xlu1 %1671, %v2440_v7   ;;  %1408 = vperm.xlu2 %1672, %v2419_v9   ;;  %v738_v7 = vadd.f32 %v706_v47, %v528_v38 }
 0x442   :  { %v1282_v29 = vpop.permute.xlu2 %1281  ;;  %v948_v19 = vadd.f32 %v916_v18, %v738_v7 }
 0x444   :  { %v1157_v3 = vadd.f32 %v2486_v50, %v948_v19 }
 0x44a   :  { %v1268_v9 = vpop.permute.xlu1 %1267  ;;  %v1288_v55 = vpop.permute.xlu2 %1287 }
 0x44b   :  { %v1331_v22 = vsel %vm1122_vm1, %v1268_v9, %v1270_v37  ;;  %v1278_v30 = vpop.permute.xlu0 %1277 }
 0x44c   :  { %v2779_v21 = vadd.f32 %v1331_v22, %v3107_v23  ;;  %v1333_v52 = vsel %vm1122_vm1, %v1276_v61, %v1278_v30  ;;  %v3111_v23 = vld [vmem:[#allocation64_spill] sm:$0xff] }
 0x44d   :  { %v2782_v8 = vadd.f32 %v1333_v52, %v1157_v3 }
 0x452   :  { %v1274_v31 = vpop.permute.xlu1 %1273  ;;  %v1294_v1 = vpop.permute.xlu2 %1293 }
 0x453   :  { %v1332_v0 = vsel %vm1122_vm1, %v1272_v4, %v1274_v31  ;;  %v1284_v15 = vpop.permute.xlu0 %1283  ;;  %v3110_v4 = vld [vmem:[#allocation13_spill] sm:$0xff] }
 0x454   :  { %v2786_v33 = vadd.f32 %v1332_v0, %v2468_v17  ;;  %v3109_v17 = vld [vmem:[#allocation9_spill] sm:$0xff] }
 0x45a   :  { %v1280_v50 = vpop.permute.xlu1 %1279  ;;  %v1300_v34 = vpop.permute.xlu2 %1299 }
 0x45b   :  { %v1334_v14 = vsel %vm1122_vm1, %v1280_v50, %v1282_v29  ;;  %v1290_v45 = vpop.permute.xlu0 %1289 }
 0x45c   :  { %v2790_v13 = vadd.f32 %v1334_v14, %v3108_v46  ;;  %v1336_v10 = vsel %vm1122_vm1, %v1288_v55, %v1290_v45 }
 0x45d   :  { %v2794_v43 = vadd.f32 %v1336_v10, %v2536_v12 }
 0x462   :  { %v1286_v26 = vpop.permute.xlu1 %1285  ;;  %v1306_v32 = vpop.permute.xlu2 %1305 }
 0x463   :  { %v1335_v54 = vsel %vm1122_vm1, %v1284_v15, %v1286_v26  ;;  %v1296_v11 = vpop.permute.xlu0 %1295 }
 0x464   :  { %v2798_v56 = vadd.f32 %v1335_v54, %v3109_v17 }
 0x46a   :  { %v1292_v16 = vpop.permute.xlu1 %1291  ;;  %v1312_v48 = vpop.permute.xlu2 %1311 }
 0x46b   :  { %v1302_v59 = vpop.permute.xlu0 %1301  ;;  %v1337_v2 = vsel %vm1122_vm1, %v1292_v16, %v1294_v1 }
 0x46c   :  { %v1339_v37 = vsel %vm1122_vm1, %v1300_v34, %v1302_v59  ;;  %v2803_v61 = vadd.f32 %v1337_v2, %v2542_v27 }
 0x46d   :  { %v2806_v12 = vadd.f32 %v1339_v37, %v2588_v39 }
 0x472   :  { %v1298_v58 = vpop.permute.xlu1 %1297  ;;  %v1318_v36 = vpop.permute.xlu2 %1317 }
 0x473   :  { %v1308_v51 = vpop.permute.xlu0 %1307  ;;  %v1338_v35 = vsel %vm1122_vm1, %v1296_v11, %v1298_v58 }
 0x474   :  { %v2810_v5 = vadd.f32 %v1338_v35, %v3110_v4  ;;  %v3112_v35 = vld [vmem:[#allocation68_spill] sm:$0xff] }
 0x47a   :  { %v1304_v6 = vpop.permute.xlu1 %1303  ;;  %v1324_v49 = vpop.permute.xlu2 %1323 }
 0x47b   :  { %v1314_v24 = vpop.permute.xlu0 %1313  ;;  %v1340_v29 = vsel %vm1122_vm1, %v1304_v6, %v1306_v32 }
 0x47c   :  { %v1342_v28 = vsel %vm1122_vm1, %v1312_v48, %v1314_v24  ;;  %v2815_v27 = vadd.f32 %v1340_v29, %v2595_v62 }
 0x47d   :  { %v2818_v39 = vadd.f32 %v1342_v28, %v2639_v44 }
 0x482   :  { %v1310_v42 = vpop.permute.xlu1 %1309  ;;  %v1330_v3 = vpop.permute.xlu2 %1329 }
 0x483   :  { %v1320_v47 = vpop.permute.xlu0 %1319  ;;  %v1341_v38 = vsel %vm1122_vm1, %v1308_v51, %v1310_v42 }
 0x484   :  { %v2822_v60 = vadd.f32 %v1341_v38, %v2617_v41 }
 0x48a   :  { %v1316_v18 = vpop.permute.xlu1 %1315 }
 0x48b   :  { %v1326_v7 = vpop.permute.xlu0 %1325  ;;  %v1343_v19 = vsel %vm1122_vm1, %v1316_v18, %v1318_v36 }
 0x48c   :  { %v1345_v9 = vsel %vm1122_vm1, %v1324_v49, %v1326_v7  ;;  %v2827_v62 = vadd.f32 %v1343_v19, %v2648_v63  ;;  %v1389_v63 = vpop.permute.xlu2 %1388 }
 0x48d   :  { %v2830_v44 = vadd.f32 %v1345_v9, %v2683_v53  ;;  %v1415_v53 = vmul.f32 %v1389_v63, %v2179_v57  ;;  %v1416_v46 = vmul.f32 %v1389_v63, %v3111_v23  ;;  %v1432_v29 = vmul.f32 %v1389_v63, %v3112_v35 }
 0x492   :  { %v1322_v22 = vpop.permute.xlu1 %1321 }
 0x493   :  { %v1381_v30 = vpop.permute.xlu0 %1380  ;;  %v1344_v55 = vsel %vm1122_vm1, %v1320_v47, %v1322_v22 }
 0x494   :  { %v1411_v41 = vmul.f32 %v1381_v30, %v2179_v57  ;;  %v1412_v52 = vmul.f32 %v1381_v30, %v3111_v23  ;;  %v2836_v31 = vadd.f32 %v1344_v55, %v2672_v40  ;;  %v1397_v26 = vpop.permute.xlu2 %1396  ;;  %v1427_v51 = vmul.f32 %v1381_v30, %v3055_v25 }
 0x495   :  { %v1419_v54 = vmul.f32 %v1397_v26, %v2179_v57  ;;  %v1420_v11 = vmul.f32 %v1397_v26, %v3111_v23  ;;  %v1428_v4 = vmul.f32 %v1381_v30, %v3112_v35  ;;  %v1435_v36 = vmul.f32 %v1397_v26, %v3055_v25 }
 0x496   :  { %1475 = vrot.lane.b32.xlu0 %v1411_v41, %s1715_s8  ;;  %1477 = vrot.lane.b32.xlu1 %v1412_v52, %s1715_s8  ;;  %v1436_v47 = vmul.f32 %v1397_v26, %v3112_v35 }
 0x49a   :  { %v1328_v0 = vpop.permute.xlu1 %1327 }
 0x49b   :  { %v1346_v15 = vsel %vm1122_vm1, %v1328_v0, %v1330_v3 }
 0x49c   :  { %v2843_v1 = vadd.f32 %v1346_v15, %v2686_v20  ;;  %v1401_v20 = vpop.permute.xlu0 %1400  ;;  %v1409_v37 = vpop.permute.xlu2 %1408 }
 0x49d   :  { %v1421_v17 = vmul.f32 %v1401_v20, %v2179_v57  ;;  %v1422_v16 = vmul.f32 %v1401_v20, %v3111_v23  ;;  %v1425_v58 = vmul.f32 %v1409_v37, %v2179_v57  ;;  %v1426_v48 = vmul.f32 %v1409_v37, %v3111_v23 }
 0x49e   :  { %1483 = vrot.lane.b32.xlu1 %v1415_v53, %s1715_s8  ;;  %v1437_v38 = vmul.f32 %v1401_v20, %v3055_v25  ;;  %v1438_v49 = vmul.f32 %v1401_v20, %v3112_v35  ;;  %v1441_v7 = vmul.f32 %v1409_v37, %v3055_v25  ;;  %v1442_v9 = vmul.f32 %v1409_v37, %v3112_v35 }
 0x4a2   :  { %v1385_v50 = vpop.permute.xlu1 %1384 }
 0x4a3   :  { %v1413_v14 = vmul.f32 %v1385_v50, %v2179_v57  ;;  %v1414_v40 = vmul.f32 %v1385_v50, %v3111_v23  ;;  %v1429_v6 = vmul.f32 %v1385_v50, %v3055_v25  ;;  %v1430_v24 = vmul.f32 %v1385_v50, %v3112_v35 }
 0x4a5   :  { %1481 = vrot.lane.b32.xlu0 %v1414_v40, %s1715_s8  ;;  %1479 = vrot.lane.b32.xlu2 %v1413_v14, %s1715_s8 }
 0x4aa   :  { %v1393_v45 = vpop.permute.xlu1 %1392 }
 0x4ab   :  { %v1417_v10 = vmul.f32 %v1393_v45, %v2179_v57  ;;  %v1418_v34 = vmul.f32 %v1393_v45, %v3111_v23  ;;  %v1433_v28 = vmul.f32 %v1393_v45, %v3055_v25  ;;  %v1434_v42 = vmul.f32 %v1393_v45, %v3112_v35 }
 0x4ad   :  { %1487 = vrot.lane.b32.xlu0 %v1417_v10, %s1715_s8  ;;  %1485 = vrot.lane.b32.xlu2 %v1416_v46, %s1715_s8 }
 0x4ae   :  { %1489 = vrot.lane.b32.xlu1 %v1418_v34, %s1715_s8 }
 0x4b2   :  { %v1405_v32 = vpop.permute.xlu1 %1404 }
 0x4b3   :  { %v1423_v59 = vmul.f32 %v1405_v32, %v2179_v57  ;;  %v1424_v2 = vmul.f32 %v1405_v32, %v3111_v23  ;;  %v1431_v57 = vmul.f32 %v1389_v63, %v3055_v25  ;;  %v1439_v18 = vmul.f32 %v1405_v32, %v3055_v25 }
 0x4b4   :  { %v1440_v19 = vmul.f32 %v1405_v32, %v3112_v35 }
 0x4b5   :  { %1493 = vrot.lane.b32.xlu0 %v1420_v11, %s1715_s8  ;;  %1491 = vrot.lane.b32.xlu2 %v1419_v54, %s1715_s8 }
 0x4b6   :  { %1495 = vrot.lane.b32.xlu1 %v1421_v17, %s1715_s8 }
 0x4bd   :  { %1499 = vrot.lane.b32.xlu0 %v1423_v59, %s1715_s8  ;;  %1497 = vrot.lane.b32.xlu2 %v1422_v16, %s1715_s8 }
 0x4be   :  { %1501 = vrot.lane.b32.xlu1 %v1424_v2, %s1715_s8 }
 0x4c5   :  { %1505 = vrot.lane.b32.xlu0 %v1426_v48, %s1715_s8  ;;  %1503 = vrot.lane.b32.xlu2 %v1425_v58, %s1715_s8 }
 0x4c6   :  { %1507 = vrot.lane.b32.xlu1 %v1427_v51, %s1715_s8 }
 0x4cd   :  { %1511 = vrot.lane.b32.xlu0 %v1429_v6, %s1715_s8  ;;  %1509 = vrot.lane.b32.xlu2 %v1428_v4, %s1715_s8 }
 0x4ce   :  { %1513 = vrot.lane.b32.xlu1 %v1430_v24, %s1715_s8 }
 0x4d5   :  { %1517 = vrot.lane.b32.xlu0 %v1432_v29, %s1715_s8  ;;  %1515 = vrot.lane.b32.xlu2 %v1431_v57, %s1715_s8 }
 0x4d6   :  { %1519 = vrot.lane.b32.xlu1 %v1433_v28, %s1715_s8 }
 0x4dd   :  { %1523 = vrot.lane.b32.xlu0 %v1435_v36, %s1715_s8  ;;  %1521 = vrot.lane.b32.xlu2 %v1434_v42, %s1715_s8 }
 0x4de   :  { %1525 = vrot.lane.b32.xlu1 %v1436_v47, %s1715_s8 }
 0x4e5   :  { %1529 = vrot.lane.b32.xlu0 %v1438_v49, %s1715_s8  ;;  %1527 = vrot.lane.b32.xlu2 %v1437_v38, %s1715_s8 }
 0x4e6   :  { %1531 = vrot.lane.b32.xlu1 %v1439_v18, %s1715_s8 }
 0x4ed   :  { %1535 = vrot.lane.b32.xlu0 %v1441_v7, %s1715_s8  ;;  %1533 = vrot.lane.b32.xlu2 %v1440_v19, %s1715_s8 }
 0x4ee   :  { %1537 = vrot.lane.b32.xlu1 %v1442_v9, %s1715_s8 }
 0x4ff   :  { %v1480_v3 = vpop.permute.xlu2 %1479 }
 0x507   :  { %v1486_v22 = vpop.permute.xlu2 %1485 }
 0x508   :  { %v1476_v30 = vpop.permute.xlu0 %1475  ;;  %v1478_v55 = vpop.permute.xlu1 %1477 }
 0x509   :  { %v1539_v41 = vsel %vm1122_vm1, %v1476_v30, %v1478_v55 }
 0x50a   :  { %v1571_v23 = vadd.f32 %v1539_v41, %v2779_v21 }
 0x50c   :  { %1587 = vst [vmem:[#allocation4] sm:$0xff] %v1571_v23 }
 0x50f   :  { %v1492_v53 = vpop.permute.xlu2 %1491 }
 0x510   :  { %v1484_v25 = vpop.permute.xlu1 %1483 }
 0x511   :  { %v1541_v52 = vsel %vm1122_vm1, %v1484_v25, %v1486_v22 }
 0x512   :  { %v1573_v63 = vadd.f32 %v1541_v52, %v2782_v8 }
 0x514   :  { %1589 = vst [vmem:[#allocation4 + $0x10] sm:$0xff] %v1573_v63 }
 0x517   :  { %v1482_v0 = vpop.permute.xlu0 %1481  ;;  %v1498_v14 = vpop.permute.xlu2 %1497 }
 0x518   :  { %v1540_v15 = vsel %vm1122_vm1, %v1480_v3, %v1482_v0 }
 0x519   :  { %v1572_v50 = vadd.f32 %v1540_v15, %v2786_v33 }
 0x51b   :  { %1588 = vst [vmem:[#allocation4 + $0x8] sm:$0xff] %v1572_v50 }
 0x51f   :  { %v1488_v40 = vpop.permute.xlu0 %1487  ;;  %v1504_v10 = vpop.permute.xlu2 %1503 }
 0x520   :  { %v1490_v45 = vpop.permute.xlu1 %1489 }
 0x521   :  { %v1542_v46 = vsel %vm1122_vm1, %v1488_v40, %v1490_v45 }
 0x522   :  { %v1574_v21 = vadd.f32 %v1542_v46, %v2790_v13 }
 0x524   :  { %1590 = vst [vmem:[#allocation4 + $0x18] sm:$0xff] %v1574_v21 }
 0x527   :  { %v1494_v34 = vpop.permute.xlu0 %1493  ;;  %v1510_v17 = vpop.permute.xlu2 %1509 }
 0x528   :  { %v1496_v20 = vpop.permute.xlu1 %1495  ;;  %v1543_v8 = vsel %vm1122_vm1, %v1492_v53, %v1494_v34 }
 0x529   :  { %v1544_v26 = vsel %vm1122_vm1, %v1496_v20, %v1498_v14  ;;  %v1575_v54 = vadd.f32 %v1543_v8, %v2798_v56 }
 0x52a   :  { %v1576_v33 = vadd.f32 %v1544_v26, %v2794_v43 }
 0x52b   :  { %1591 = vst [vmem:[#allocation4 + $0x20] sm:$0xff] %v1575_v54 }
 0x52c   :  { %1592 = vst [vmem:[#allocation4 + $0x28] sm:$0xff] %v1576_v33 }
 0x52f   :  { %v1500_v11 = vpop.permute.xlu0 %1499  ;;  %v1516_v48 = vpop.permute.xlu2 %1515 }
 0x530   :  { %v1502_v32 = vpop.permute.xlu1 %1501 }
 0x531   :  { %v1545_v16 = vsel %vm1122_vm1, %v1500_v11, %v1502_v32 }
 0x532   :  { %v1577_v13 = vadd.f32 %v1545_v16, %v2803_v61 }
 0x534   :  { %1593 = vst [vmem:[#allocation4 + $0x30] sm:$0xff] %v1577_v13 }
 0x537   :  { %v1506_v59 = vpop.permute.xlu0 %1505  ;;  %v1522_v6 = vpop.permute.xlu2 %1521 }
 0x538   :  { %v1508_v2 = vpop.permute.xlu1 %1507  ;;  %v1546_v37 = vsel %vm1122_vm1, %v1504_v10, %v1506_v59 }
 0x539   :  { %v1547_v58 = vsel %vm1122_vm1, %v1508_v2, %v1510_v17  ;;  %v1578_v56 = vadd.f32 %v1546_v37, %v2810_v5 }
 0x53a   :  { %v1579_v43 = vadd.f32 %v1547_v58, %v2806_v12 }
 0x53b   :  { %1594 = vst [vmem:[#allocation4 + $0x38] sm:$0xff] %v1578_v56 }
 0x53c   :  { %1595 = vst [vmem:[#allocation4 + $0x40] sm:$0xff] %v1579_v43 }
 0x53f   :  { %v1512_v51 = vpop.permute.xlu0 %1511  ;;  %v1528_v36 = vpop.permute.xlu2 %1527 }
 0x540   :  { %v1514_v35 = vpop.permute.xlu1 %1513 }
 0x541   :  { %v1548_v4 = vsel %vm1122_vm1, %v1512_v51, %v1514_v35 }
 0x542   :  { %v1580_v61 = vadd.f32 %v1548_v4, %v2815_v27 }
 0x544   :  { %1596 = vst [vmem:[#allocation4 + $0x48] sm:$0xff] %v1580_v61 }
 0x547   :  { %v1518_v24 = vpop.permute.xlu0 %1517  ;;  %v1534_v18 = vpop.permute.xlu2 %1533 }
 0x548   :  { %v1520_v57 = vpop.permute.xlu1 %1519  ;;  %v1549_v29 = vsel %vm1122_vm1, %v1516_v48, %v1518_v24 }
 0x549   :  { %v1550_v28 = vsel %vm1122_vm1, %v1520_v57, %v1522_v6  ;;  %v1581_v5 = vadd.f32 %v1549_v29, %v2822_v60 }
 0x54a   :  { %v1582_v12 = vadd.f32 %v1550_v28, %v2818_v39 }
 0x54b   :  { %1597 = vst [vmem:[#allocation4 + $0x50] sm:$0xff] %v1581_v5 }
 0x54c   :  { %1598 = vst [vmem:[#allocation4 + $0x58] sm:$0xff] %v1582_v12 }
 0x54f   :  { %v1524_v42 = vpop.permute.xlu0 %1523 }
 0x550   :  { %v1526_v47 = vpop.permute.xlu1 %1525 }
 0x551   :  { %v1551_v38 = vsel %vm1122_vm1, %v1524_v42, %v1526_v47 }
 0x552   :  { %v1583_v27 = vadd.f32 %v1551_v38, %v2827_v62 }
 0x554   :  { %1599 = vst [vmem:[#allocation4 + $0x60] sm:$0xff] %v1583_v27 }
 0x557   :  { %v1530_v49 = vpop.permute.xlu0 %1529 }
 0x558   :  { %v1532_v7 = vpop.permute.xlu1 %1531  ;;  %v1552_v19 = vsel %vm1122_vm1, %v1528_v36, %v1530_v49 }
 0x559   :  { %v1553_v9 = vsel %vm1122_vm1, %v1532_v7, %v1534_v18  ;;  %v1584_v60 = vadd.f32 %v1552_v19, %v2836_v31 }
 0x55a   :  { %v1585_v39 = vadd.f32 %v1553_v9, %v2830_v44 }
 0x55b   :  { %1600 = vst [vmem:[#allocation4 + $0x68] sm:$0xff] %v1584_v60 }
 0x55c   :  { %1601 = vst [vmem:[#allocation4 + $0x70] sm:$0xff] %v1585_v39 }
 0x55f   :  { %v1536_v62 = vpop.permute.xlu0 %1535 }
 0x560   :  { %v1538_v3 = vpop.permute.xlu1 %1537 }
 0x561   :  { %v1554_v22 = vsel %vm1122_vm1, %v1536_v62, %v1538_v3 }
 0x562   :  { %v1586_v30 = vadd.f32 %v1554_v22, %v2843_v1 }
 0x564   :  { %1602 = vst [vmem:[#allocation4 + $0x78] sm:$0xff] %v1586_v30 }
 0x565   :  { %1615 = dma.vmem_to_hbm [thread:$0]  %s1608_s25, 2048, %s1610_s28, [#allocation5], %s1719_s29, %s1719_s29, %s1720_s30  }
 0x566   :  { %1705 = dma.done.wait [#allocation5], 2048  }
 0x567   :  { %1706 = vsyncadd [#allocation5], 4294965248 }
 0x568   :  { %1620 = vsyncpa [#allocation5], 1 }

</bundles_post_ra>
